<compile_context>
chip_gen: v6e
topology: v6e:2x2x1
jax: 0.10.0
libtpu: 0.0.40
codegen_flags: <defaults>
</compile_context>

<pallas_src>
import math
from functools import partial

import jax
import jax.numpy as jnp
from jax import lax
from jax.experimental import pallas as pl
from jax.experimental.pallas import tpu as pltpu


def _round_up(x, m):
    return (x + m - 1) // m * m


# ----------------------------------------------------------------------------
# Pallas kernel: tiled causal depthwise (per-channel) convolution.
# ----------------------------------------------------------------------------
def _causal_conv_kernel(i_map_ref, j_map_ref,            # scalar prefetch (SMEM)
                        k_ref, uprev_ref, ucur_ref,      # inputs (VMEM tiles)
                        y_ref,                           # output (VMEM tile)
                        acc_ref, w8_ref,                 # scratch
                        *, time_tile, pairs_per_half):
    T = time_tile
    h = pl.program_id(0)
    p_id = pl.program_id(3)
    flat = h * pairs_per_half + p_id
    i = i_map_ref[flat]          # output-time tile index
    j = j_map_ref[flat]          # input-time tile index (j <= i; -1 == pad)

    @pl.when(j >= 0)             # j == -1 marks a no-op padding step
    def _():
        @pl.when(j == 0)
        def _():
            acc_ref[...] = jnp.zeros_like(acc_ref)

        # 2T-row input window W = [u_{j-1} ; u_j] and its 8 sublane-shifted
        # copies: w8[p][m] = W[(m - p) mod 2T].  Only 8 XLU rolls per pair.
        w = jnp.concatenate([uprev_ref[0].astype(jnp.float32),
                             ucur_ref[0].astype(jnp.float32)], axis=0)
        w8_ref[0] = w
        for p in range(1, 8):
            w8_ref[p] = pltpu.roll(w, p, axis=0)

        # y[i*T + t] += sum_r k[(i-j)*T + r] * u[j*T + t - r]
        #            =  sum_{p<8, q<T/8} k_blk[8q + p] * w8[p][T - 8q + t]
        acc = acc_ref[...]
        for p in range(8):                               # static: 8 fori loops
            def body(q, acc, p=p):
                start = pl.multiple_of(T - 8 * q, 8)     # 8-aligned slice
                v = w8_ref[p, pl.ds(start, T), :]        # (T, TD) aligned load
                k_row = k_ref[pl.ds(8 * q + p, 1), :].astype(jnp.float32)
                return acc + v * k_row                   # pure VPU FMA
            acc = lax.fori_loop(0, T // 8, body, acc, unroll=2)
        acc_ref[...] = acc                               # one store per step

        @pl.when(j == i)
        def _():
            y_ref[0] = acc.astype(y_ref.dtype)


def rtf2_conv(u, k, *, time_tile=128, lane_tile=128):
    """u: (B, L, D), k: (D, L) -> y[b,t,d] = sum_{s<=t} k[d,s] * u[b,t-s,d]."""
    B, L, D = u.shape
    assert k.shape == (D, L)
    TD = lane_tile
    assert TD % 128 == 0

    # ---- lane packing: put several batch elements on the lane axis if D<128.
    pack = 1
    if D <= TD:
        for cand in range(min(B, TD // D), 0, -1):
            if B % cand == 0:
                pack = cand
                break
    Bp = B // pack
    Dk = pack * D
    Dp = _round_up(Dk, TD)
    nD = Dp // TD

    itemsize = jnp.dtype(u.dtype).itemsize
    sub = {4: 8, 2: 16, 1: 32}[itemsize]        # sublane multiple per dtype
    T = min(time_tile, _round_up(L, sub))
    assert T % sub == 0 and T % 8 == 0, (T, sub)
    Lp = _round_up(L, T)
    nI = Lp // T

    if pack > 1:
        u = u.reshape(Bp, pack, L, D).transpose(0, 2, 1, 3).reshape(Bp, L, Dk)
    kT = jnp.asarray(k).T.astype(u.dtype)                     # (L, D)
    if pack > 1:
        kT = jnp.tile(kT, (1, pack))                          # (L, Dk)
    kp = jnp.pad(kT, ((0, Lp - L), (0, Dp - Dk)))             # (Lp, Dp)
    # u padded with one zero tile in front (the "previous tile" for j == 0).
    up = jnp.pad(u, ((0, 0), (T, Lp - L), (0, Dp - Dk)))      # (Bp, T+Lp, Dp)

    # ---- triangular (i, j) tile-pair schedule, split into H balanced halves
    #      (leading parallel axis) so both v7x TensorCores get work.
    H = 2 if nI >= 2 else 1
    buckets = [[] for _ in range(H)]
    load = [0] * H
    for i in sorted(range(nI), key=lambda x: -(x + 1)):
        hh = load.index(min(load))
        buckets[hh].append(i)
        load[hh] += i + 1
    half_pairs = [[(i, j) for i in sorted(b) for j in range(i + 1)]
                  for b in buckets]
    P = max(len(prs) for prs in half_pairs)
    n_real = sum(len(prs) for prs in half_pairs)
    i_flat, j_flat = [], []
    for prs in half_pairs:
        last_i = prs[-1][0]
        padded = prs + [(last_i, -1)] * (P - len(prs))        # -1: no-op pad
        i_flat += [ij[0] for ij in padded]
        j_flat += [ij[1] for ij in padded]
    i_map = jnp.asarray(i_flat, jnp.int32)
    j_map = jnp.asarray(j_flat, jnp.int32)

    def _k_map(hh, b, d, p, im, jm):            # k lag block (i - j)
        f = hh * P + p
        return (im[f] - jnp.maximum(jm[f], 0), d)

    def _uprev_map(hh, b, d, p, im, jm):        # u tile j-1 (zeros for j == 0)
        f = hh * P + p
        return (b, jnp.maximum(jm[f], 0), d)

    def _ucur_map(hh, b, d, p, im, jm):         # u tile j
        f = hh * P + p
        return (b, jnp.maximum(jm[f], 0) + 1, d)

    def _y_map(hh, b, d, p, im, jm):            # output tile i
        f = hh * P + p
        return (b, im[f], d)

    blk = T * TD
    vmem_bytes = (8 * 2 * blk * 4 + blk * 4           # w8 + acc scratch (f32)
                  + 2 * 4 * blk * itemsize)           # double-buffered k/u/u/y
    vmem_limit = min(max(4 * vmem_bytes, 16 * 1024 * 1024), 56 * 1024 * 1024)
    flops = 2 * Bp * nD * n_real * T * T * TD
    bytes_accessed = itemsize * (Bp * nD * n_real * 3 * blk + 2 * Bp * Lp * Dp)

    grid_spec = pltpu.PrefetchScalarGridSpec(
        num_scalar_prefetch=2,
        grid=(H, Bp, nD, P),
        in_specs=[
            pl.BlockSpec((T, TD), _k_map),            # single k lag-block
            pl.BlockSpec((1, T, TD), _uprev_map),     # previous u tile
            pl.BlockSpec((1, T, TD), _ucur_map),      # current u tile
        ],
        out_specs=pl.BlockSpec((1, T, TD), _y_map),
        scratch_shapes=[pltpu.VMEM((T, TD), jnp.float32),        # acc
                        pltpu.VMEM((8, 2 * T, TD), jnp.float32)],  # w8 copies
    )

    y = pl.pallas_call(
        partial(_causal_conv_kernel, time_tile=T, pairs_per_half=P),
        out_shape=jax.ShapeDtypeStruct((Bp, Lp, Dp), u.dtype),
        grid_spec=grid_spec,
        compiler_params=pltpu.CompilerParams(
            dimension_semantics=("parallel", "parallel", "parallel",
                                 "arbitrary"),
            vmem_limit_bytes=vmem_limit),
        cost_estimate=pl.CostEstimate(flops=flops, transcendentals=0,
                                      bytes_accessed=bytes_accessed),
    )(i_map, j_map, kp, up, up)

    y = y[:, :L, :Dk]
    if pack > 1:
        y = y.reshape(Bp, L, pack, D).transpose(0, 2, 1, 3).reshape(B, L, D)
    return y


# ----------------------------------------------------------------------------
# RTF kernel generation (glue, plain JAX): mirrors get_C_prime() / get_k().
# TODO(synk): FFT polynomial division has no Pallas equivalent; kept in JAX.
# ----------------------------------------------------------------------------
def _mat_power(A, n):
    """Batched matrix power by binary exponentiation (n is a Python int)."""
    result = jnp.broadcast_to(jnp.eye(A.shape[-1], dtype=A.dtype), A.shape)
    base = A
    while n > 0:
        if n & 1:
            result = result @ base
        base = base @ base
        n >>= 1
    return result


def get_c_prime(ab, D, N, L_trunc):
    a = ab[:D]                                             # (D, N)
    c = ab[D:]                                             # (D, N)
    A0 = jnp.roll(jnp.eye(N, dtype=ab.dtype), 1, axis=0)   # (N, N) shift matrix
    A = jnp.broadcast_to(A0, (D, N, N))
    A = A.at[:, 0, :].set(-a)                              # first row / channel
    AL = _mat_power(A, L_trunc)                            # (D, N, N)
    I_AL = jnp.eye(N, dtype=ab.dtype) - AL
    return jnp.einsum('cn,cnm->cm', c, I_AL)               # (D, N)


def get_k(ab, h_0, D, N, L_trunc, l):
    assert l <= L_trunc
    Lpad = L_trunc + (L_trunc % 2)
    a = ab[:D]                                                        # (D, N)
    a_pad = jnp.pad(a, ((0, 0), (1, L_trunc - N - 1 + L_trunc % 2)))  # (D, Lpad)
    b = get_c_prime(ab, D, N, L_trunc)                                # (D, N)
    b_pad = jnp.pad(b, ((0, 0), (0, L_trunc - N + L_trunc % 2)))      # (D, Lpad)
    ab_cat = jnp.concatenate([a_pad, b_pad], axis=0)                  # (2D, Lpad)
    ab_cat = ab_cat.at[:D, 0].set(1.0)                                # monic denom
    AB = jnp.fft.rfft(ab_cat, axis=-1)
    K = AB[D:] / AB[:D] + h_0[:, None]
    k = jnp.fft.irfft(K, n=Lpad, axis=-1)[:, :l]                      # (D, l)
    return k


def rtf2_forward(u, ab, h_0, state_size, trunc_len, *, time_tile=128):
    """u: (B, L, D) -> y: (B, L, D)."""
    B, l, D = u.shape
    k = get_k(ab, h_0, D, state_size, trunc_len, l)   # (D, l)
    return rtf2_conv(u, k, time_tile=time_tile)


# ----------------------------------------------------------------------------
# Demo / self-check
# ----------------------------------------------------------------------------
if __name__ == "__main__":
    B, L, D = 2, 20, 32          # batch, sequence length, d_model
    N, L_TRUNC = 4, 32           # state_size, trunc_len (> state_size)
    TIME_TILE = 16               # small tile so the demo exercises the
                                 # triangular multi-tile accumulation path,
                                 # the q > 0 inner loop, lane packing and the
                                 # padded half of the 2-way schedule (nI == 2)

    key = jax.random.PRNGKey(0)
    k1, k2, k3 = jax.random.split(key, 3)
    # module params: ab: (D + num_a, N) with num_a = D, h_0: (D,)
    ab = 0.1 * jax.random.normal(k1, (2 * D, N), jnp.float32)
    h_0 = jax.random.normal(k2, (D,), jnp.float32)
    u = jax.random.normal(k3, (B, L, D), jnp.float32)

    y = rtf2_forward(u, ab, h_0, N, L_TRUNC, time_tile=TIME_TILE)
    y = jax.block_until_ready(y)

    # Reference: the FFT convolution path of the PyTorch forward (pure JAX).
    k = get_k(ab, h_0, D, N, L_TRUNC, L)                 # (D, L)
    n = 2 * L - (L % 2)
    Kf = jnp.fft.rfft(k, n=n, axis=-1)                   # (D, nf)
    Uf = jnp.fft.rfft(u, n=n, axis=1)                    # (B, nf, D)
    y_ref = jnp.fft.irfft(Kf.T[None, :, :] * Uf, n=n, axis=1)[:, :L, :]

    err = float(jnp.max(jnp.abs(y - y_ref)))
    assert err < 5e-3, f"max abs err {err}"
    print("KERNEL_OK")
</pallas_src>

<mosaic_0001>
module attributes {stable_mosaic.version = 11 : i64} {
  func.func @_causal_conv_kernel(%arg0: i32, %arg1: i32, %arg2: i32, %arg3: i32, %arg4: memref<4xi32, #tpu.memory_space<smem>>, %arg5: memref<4xi32, #tpu.memory_space<smem>>, %arg6: memref<16x128xf32, #tpu.memory_space<vmem>>, %arg7: memref<1x16x128xf32, #tpu.memory_space<vmem>>, %arg8: memref<1x16x128xf32, #tpu.memory_space<vmem>>, %arg9: memref<1x16x128xf32, #tpu.memory_space<vmem>>, %arg10: memref<16x128xf32, #tpu.memory_space<vmem>>, %arg11: memref<8x32x128xf32, #tpu.memory_space<vmem>>) attributes {dimension_semantics = [#tpu.dimension_semantics<parallel>, #tpu.dimension_semantics<parallel>, #tpu.dimension_semantics<parallel>, #tpu.dimension_semantics<arbitrary>], iteration_bounds = array<i64: 2, 1, 1, 2>, scalar_prefetch = 2 : i64, scratch_operands = 2 : i64, tpu.core_type = #tpu.core_type<tc>, window_params = [{transform_indices = @transform_0, window_bounds = array<i64: 16, 128>}, {transform_indices = @transform_1, window_bounds = array<i64: 1, 16, 128>}, {transform_indices = @transform_2, window_bounds = array<i64: 1, 16, 128>}, {transform_indices = @transform_3, window_bounds = array<i64: 1, 16, 128>}]} {
    %c2_i32 = arith.constant 2 : i32
    %0 = arith.muli %arg0, %c2_i32 : i32
    %1 = arith.addi %0, %arg3 : i32
    %2 = arith.index_cast %1 : i32 to index
    %3 = memref.load %arg4[%2] : memref<4xi32, #tpu.memory_space<smem>>
    %4 = arith.index_cast %1 : i32 to index
    %5 = memref.load %arg5[%4] : memref<4xi32, #tpu.memory_space<smem>>
    %c0_i32 = arith.constant 0 : i32
    %6 = arith.cmpi sge, %5, %c0_i32 : i32
    %7 = arith.extui %6 : i1 to i32
    %c0_i32_0 = arith.constant 0 : i32
    %8 = arith.cmpi ne, %7, %c0_i32_0 : i32
    scf.if %8 {
      %c0_i32_1 = arith.constant 0 : i32
      %9 = arith.cmpi eq, %5, %c0_i32_1 : i32
      %10 = arith.extui %9 : i1 to i32
      %c0_i32_2 = arith.constant 0 : i32
      %11 = arith.cmpi ne, %10, %c0_i32_2 : i32
      scf.if %11 {
        %cst = arith.constant 0.000000e+00 : f32
        %261 = vector.broadcast %cst : f32 to vector<16x128xf32>
        %c0_165 = arith.constant 0 : index
        %c0_166 = arith.constant 0 : index
        %262 = vector.load %arg10[%c0_165, %c0_166] : memref<16x128xf32, #tpu.memory_space<vmem>>, vector<16x128xf32>
        tpu.vector_store %arg10[%c0_165, %c0_166], %261 {strides = array<i32>} : memref<16x128xf32, #tpu.memory_space<vmem>>, vector<16x128xf32>,
      } else {
      }
      %c0 = arith.constant 0 : index
      %c0_3 = arith.constant 0 : index
      %c0_4 = arith.constant 0 : index
      %12 = vector.load %arg7[%c0, %c0_3, %c0_4] : memref<1x16x128xf32, #tpu.memory_space<vmem>>, vector<1x16x128xf32>
      %13 = vector.shape_cast %12 : vector<1x16x128xf32> to vector<16x128xf32>
      %c0_5 = arith.constant 0 : index
      %c0_6 = arith.constant 0 : index
      %c0_7 = arith.constant 0 : index
      %14 = vector.load %arg8[%c0_5, %c0_6, %c0_7] : memref<1x16x128xf32, #tpu.memory_space<vmem>>, vector<1x16x128xf32>
      %15 = vector.shape_cast %14 : vector<1x16x128xf32> to vector<16x128xf32>
      %16 = tpu.concatenate %13, %15 in 0 : vector<16x128xf32>, vector<16x128xf32> -> vector<32x128xf32>
      %c0_8 = arith.constant 0 : index
      %c0_9 = arith.constant 0 : index
      %c0_10 = arith.constant 0 : index
      %17 = vector.load %arg11[%c0_8, %c0_9, %c0_10] : memref<8x32x128xf32, #tpu.memory_space<vmem>>, vector<1x32x128xf32>
      %18 = vector.shape_cast %17 : vector<1x32x128xf32> to vector<32x128xf32>
      %19 = vector.shape_cast %16 : vector<32x128xf32> to vector<1x32x128xf32>
      tpu.vector_store %arg11[%c0_8, %c0_9, %c0_10], %19 {strides = array<i32>} : memref<8x32x128xf32, #tpu.memory_space<vmem>>, vector<1x32x128xf32>,
      %c1_i32 = arith.constant 1 : i32
      %20 = tpu.dynamic_rotate %16 by %c1_i32 dim 0 : vector<32x128xf32>, i32 -> vector<32x128xf32>
      %c1 = arith.constant 1 : index
      %c0_11 = arith.constant 0 : index
      %c0_12 = arith.constant 0 : index
      %21 = vector.load %arg11[%c1, %c0_11, %c0_12] : memref<8x32x128xf32, #tpu.memory_space<vmem>>, vector<1x32x128xf32>
      %22 = vector.shape_cast %21 : vector<1x32x128xf32> to vector<32x128xf32>
      %23 = vector.shape_cast %20 : vector<32x128xf32> to vector<1x32x128xf32>
      tpu.vector_store %arg11[%c1, %c0_11, %c0_12], %23 {strides = array<i32>} : memref<8x32x128xf32, #tpu.memory_space<vmem>>, vector<1x32x128xf32>,
      %c2_i32_13 = arith.constant 2 : i32
      %24 = tpu.dynamic_rotate %16 by %c2_i32_13 dim 0 : vector<32x128xf32>, i32 -> vector<32x128xf32>
      %c2 = arith.constant 2 : index
      %c0_14 = arith.constant 0 : index
      %c0_15 = arith.constant 0 : index
      %25 = vector.load %arg11[%c2, %c0_14, %c0_15] : memref<8x32x128xf32, #tpu.memory_space<vmem>>, vector<1x32x128xf32>
      %26 = vector.shape_cast %25 : vector<1x32x128xf32> to vector<32x128xf32>
      %27 = vector.shape_cast %24 : vector<32x128xf32> to vector<1x32x128xf32>
      tpu.vector_store %arg11[%c2, %c0_14, %c0_15], %27 {strides = array<i32>} : memref<8x32x128xf32, #tpu.memory_space<vmem>>, vector<1x32x128xf32>,
      %c3_i32 = arith.constant 3 : i32
      %28 = tpu.dynamic_rotate %16 by %c3_i32 dim 0 : vector<32x128xf32>, i32 -> vector<32x128xf32>
      %c3 = arith.constant 3 : index
      %c0_16 = arith.constant 0 : index
      %c0_17 = arith.constant 0 : index
      %29 = vector.load %arg11[%c3, %c0_16, %c0_17] : memref<8x32x128xf32, #tpu.memory_space<vmem>>, vector<1x32x128xf32>
      %30 = vector.shape_cast %29 : vector<1x32x128xf32> to vector<32x128xf32>
      %31 = vector.shape_cast %28 : vector<32x128xf32> to vector<1x32x128xf32>
      tpu.vector_store %arg11[%c3, %c0_16, %c0_17], %31 {strides = array<i32>} : memref<8x32x128xf32, #tpu.memory_space<vmem>>, vector<1x32x128xf32>,
      %c4_i32 = arith.constant 4 : i32
      %32 = tpu.dynamic_rotate %16 by %c4_i32 dim 0 : vector<32x128xf32>, i32 -> vector<32x128xf32>
      %c4 = arith.constant 4 : index
      %c0_18 = arith.constant 0 : index
      %c0_19 = arith.constant 0 : index
      %33 = vector.load %arg11[%c4, %c0_18, %c0_19] : memref<8x32x128xf32, #tpu.memory_space<vmem>>, vector<1x32x128xf32>
      %34 = vector.shape_cast %33 : vector<1x32x128xf32> to vector<32x128xf32>
      %35 = vector.shape_cast %32 : vector<32x128xf32> to vector<1x32x128xf32>
      tpu.vector_store %arg11[%c4, %c0_18, %c0_19], %35 {strides = array<i32>} : memref<8x32x128xf32, #tpu.memory_space<vmem>>, vector<1x32x128xf32>,
      %c5_i32 = arith.constant 5 : i32
      %36 = tpu.dynamic_rotate %16 by %c5_i32 dim 0 : vector<32x128xf32>, i32 -> vector<32x128xf32>
      %c5 = arith.constant 5 : index
      %c0_20 = arith.constant 0 : index
      %c0_21 = arith.constant 0 : index
      %37 = vector.load %arg11[%c5, %c0_20, %c0_21] : memref<8x32x128xf32, #tpu.memory_space<vmem>>, vector<1x32x128xf32>
      %38 = vector.shape_cast %37 : vector<1x32x128xf32> to vector<32x128xf32>
      %39 = vector.shape_cast %36 : vector<32x128xf32> to vector<1x32x128xf32>
      tpu.vector_store %arg11[%c5, %c0_20, %c0_21], %39 {strides = array<i32>} : memref<8x32x128xf32, #tpu.memory_space<vmem>>, vector<1x32x128xf32>,
      %c6_i32 = arith.constant 6 : i32
      %40 = tpu.dynamic_rotate %16 by %c6_i32 dim 0 : vector<32x128xf32>, i32 -> vector<32x128xf32>
      %c6 = arith.constant 6 : index
      %c0_22 = arith.constant 0 : index
      %c0_23 = arith.constant 0 : index
      %41 = vector.load %arg11[%c6, %c0_22, %c0_23] : memref<8x32x128xf32, #tpu.memory_space<vmem>>, vector<1x32x128xf32>
      %42 = vector.shape_cast %41 : vector<1x32x128xf32> to vector<32x128xf32>
      %43 = vector.shape_cast %40 : vector<32x128xf32> to vector<1x32x128xf32>
      tpu.vector_store %arg11[%c6, %c0_22, %c0_23], %43 {strides = array<i32>} : memref<8x32x128xf32, #tpu.memory_space<vmem>>, vector<1x32x128xf32>,
      %c7_i32 = arith.constant 7 : i32
      %44 = tpu.dynamic_rotate %16 by %c7_i32 dim 0 : vector<32x128xf32>, i32 -> vector<32x128xf32>
      %c7 = arith.constant 7 : index
      %c0_24 = arith.constant 0 : index
      %c0_25 = arith.constant 0 : index
      %45 = vector.load %arg11[%c7, %c0_24, %c0_25] : memref<8x32x128xf32, #tpu.memory_space<vmem>>, vector<1x32x128xf32>
      %46 = vector.shape_cast %45 : vector<1x32x128xf32> to vector<32x128xf32>
      %47 = vector.shape_cast %44 : vector<32x128xf32> to vector<1x32x128xf32>
      tpu.vector_store %arg11[%c7, %c0_24, %c0_25], %47 {strides = array<i32>} : memref<8x32x128xf32, #tpu.memory_space<vmem>>, vector<1x32x128xf32>,
      %c0_26 = arith.constant 0 : index
      %c0_27 = arith.constant 0 : index
      %48 = vector.load %arg10[%c0_26, %c0_27] : memref<16x128xf32, #tpu.memory_space<vmem>>, vector<16x128xf32>
      %c0_i32_28 = arith.constant 0 : i32
      %c8_i32 = arith.constant 8 : i32
      %49 = arith.muli %c8_i32, %c0_i32_28 : i32
      %c16_i32 = arith.constant 16 : i32
      %50 = arith.subi %c16_i32, %49 : i32
      %51 = tpu.assume_multiple %50, 8 : i32
      %c0_29 = arith.constant 0 : index
      %52 = arith.index_cast %51 : i32 to index
      %c0_30 = arith.constant 0 : index
      %53 = vector.load %arg11[%c0_29, %52, %c0_30] : memref<8x32x128xf32, #tpu.memory_space<vmem>>, vector<1x16x128xf32>
      %54 = vector.shape_cast %53 : vector<1x16x128xf32> to vector<16x128xf32>
      %c8_i32_31 = arith.constant 8 : i32
      %55 = arith.muli %c8_i32_31, %c0_i32_28 : i32
      %c0_i32_32 = arith.constant 0 : i32
      %56 = arith.addi %55, %c0_i32_32 : i32
      %57 = arith.index_cast %56 : i32 to index
      %c0_33 = arith.constant 0 : index
      %58 = vector.load %arg6[%57, %c0_33] : memref<16x128xf32, #tpu.memory_space<vmem>>, vector<1x128xf32>
      %59 = vector.broadcast %58 : vector<1x128xf32> to vector<16x128xf32>
      %60 = arith.mulf %54, %59 : vector<16x128xf32>
      %61 = arith.addf %48, %60 : vector<16x128xf32>
      %c1_i32_34 = arith.constant 1 : i32
      %c8_i32_35 = arith.constant 8 : i32
      %62 = arith.muli %c8_i32_35, %c1_i32_34 : i32
      %c16_i32_36 = arith.constant 16 : i32
      %63 = arith.subi %c16_i32_36, %62 : i32
      %64 = tpu.assume_multiple %63, 8 : i32
      %c0_37 = arith.constant 0 : index
      %65 = arith.index_cast %64 : i32 to index
      %c0_38 = arith.constant 0 : index
      %66 = vector.load %arg11[%c0_37, %65, %c0_38] : memref<8x32x128xf32, #tpu.memory_space<vmem>>, vector<1x16x128xf32>
      %67 = vector.shape_cast %66 : vector<1x16x128xf32> to vector<16x128xf32>
      %c8_i32_39 = arith.constant 8 : i32
      %68 = arith.muli %c8_i32_39, %c1_i32_34 : i32
      %c0_i32_40 = arith.constant 0 : i32
      %69 = arith.addi %68, %c0_i32_40 : i32
      %70 = arith.index_cast %69 : i32 to index
      %c0_41 = arith.constant 0 : index
      %71 = vector.load %arg6[%70, %c0_41] : memref<16x128xf32, #tpu.memory_space<vmem>>, vector<1x128xf32>
      %72 = vector.broadcast %71 : vector<1x128xf32> to vector<16x128xf32>
      %73 = arith.mulf %67, %72 : vector<16x128xf32>
      %74 = arith.addf %61, %73 : vector<16x128xf32>
      %c2_i32_42 = arith.constant 2 : i32
      %c0_i32_43 = arith.constant 0 : i32
      %c8_i32_44 = arith.constant 8 : i32
      %75 = arith.muli %c8_i32_44, %c0_i32_43 : i32
      %c16_i32_45 = arith.constant 16 : i32
      %76 = arith.subi %c16_i32_45, %75 : i32
      %77 = tpu.assume_multiple %76, 8 : i32
      %c1_46 = arith.constant 1 : index
      %78 = arith.index_cast %77 : i32 to index
      %c0_47 = arith.constant 0 : index
      %79 = vector.load %arg11[%c1_46, %78, %c0_47] : memref<8x32x128xf32, #tpu.memory_space<vmem>>, vector<1x16x128xf32>
      %80 = vector.shape_cast %79 : vector<1x16x128xf32> to vector<16x128xf32>
      %c8_i32_48 = arith.constant 8 : i32
      %81 = arith.muli %c8_i32_48, %c0_i32_43 : i32
      %c1_i32_49 = arith.constant 1 : i32
      %82 = arith.addi %81, %c1_i32_49 : i32
      %83 = arith.index_cast %82 : i32 to index
      %c0_50 = arith.constant 0 : index
      %84 = vector.load %arg6[%83, %c0_50] : memref<16x128xf32, #tpu.memory_space<vmem>>, vector<1x128xf32>
      %85 = vector.broadcast %84 : vector<1x128xf32> to vector<16x128xf32>
      %86 = arith.mulf %80, %85 : vector<16x128xf32>
      %87 = arith.addf %74, %86 : vector<16x128xf32>
      %c1_i32_51 = arith.constant 1 : i32
      %c8_i32_52 = arith.constant 8 : i32
      %88 = arith.muli %c8_i32_52, %c1_i32_51 : i32
      %c16_i32_53 = arith.constant 16 : i32
      %89 = arith.subi %c16_i32_53, %88 : i32
      %90 = tpu.assume_multiple %89, 8 : i32
      %c1_54 = arith.constant 1 : index
      %91 = arith.index_cast %90 : i32 to index
      %c0_55 = arith.constant 0 : index
      %92 = vector.load %arg11[%c1_54, %91, %c0_55] : memref<8x32x128xf32, #tpu.memory_space<vmem>>, vector<1x16x128xf32>
      %93 = vector.shape_cast %92 : vector<1x16x128xf32> to vector<16x128xf32>
      %c8_i32_56 = arith.constant 8 : i32
      %94 = arith.muli %c8_i32_56, %c1_i32_51 : i32
      %c1_i32_57 = arith.constant 1 : i32
      %95 = arith.addi %94, %c1_i32_57 : i32
      %96 = arith.index_cast %95 : i32 to index
      %c0_58 = arith.constant 0 : index
      %97 = vector.load %arg6[%96, %c0_58] : memref<16x128xf32, #tpu.memory_space<vmem>>, vector<1x128xf32>
      %98 = vector.broadcast %97 : vector<1x128xf32> to vector<16x128xf32>
      %99 = arith.mulf %93, %98 : vector<16x128xf32>
      %100 = arith.addf %87, %99 : vector<16x128xf32>
      %c2_i32_59 = arith.constant 2 : i32
      %c0_i32_60 = arith.constant 0 : i32
      %c8_i32_61 = arith.constant 8 : i32
      %101 = arith.muli %c8_i32_61, %c0_i32_60 : i32
      %c16_i32_62 = arith.constant 16 : i32
      %102 = arith.subi %c16_i32_62, %101 : i32
      %103 = tpu.assume_multiple %102, 8 : i32
      %c2_63 = arith.constant 2 : index
      %104 = arith.index_cast %103 : i32 to index
      %c0_64 = arith.constant 0 : index
      %105 = vector.load %arg11[%c2_63, %104, %c0_64] : memref<8x32x128xf32, #tpu.memory_space<vmem>>, vector<1x16x128xf32>
      %106 = vector.shape_cast %105 : vector<1x16x128xf32> to vector<16x128xf32>
      %c8_i32_65 = arith.constant 8 : i32
      %107 = arith.muli %c8_i32_65, %c0_i32_60 : i32
      %c2_i32_66 = arith.constant 2 : i32
      %108 = arith.addi %107, %c2_i32_66 : i32
      %109 = arith.index_cast %108 : i32 to index
      %c0_67 = arith.constant 0 : index
      %110 = vector.load %arg6[%109, %c0_67] : memref<16x128xf32, #tpu.memory_space<vmem>>, vector<1x128xf32>
      %111 = vector.broadcast %110 : vector<1x128xf32> to vector<16x128xf32>
      %112 = arith.mulf %106, %111 : vector<16x128xf32>
      %113 = arith.addf %100, %112 : vector<16x128xf32>
      %c1_i32_68 = arith.constant 1 : i32
      %c8_i32_69 = arith.constant 8 : i32
      %114 = arith.muli %c8_i32_69, %c1_i32_68 : i32
      %c16_i32_70 = arith.constant 16 : i32
      %115 = arith.subi %c16_i32_70, %114 : i32
      %116 = tpu.assume_multiple %115, 8 : i32
      %c2_71 = arith.constant 2 : index
      %117 = arith.index_cast %116 : i32 to index
      %c0_72 = arith.constant 0 : index
      %118 = vector.load %arg11[%c2_71, %117, %c0_72] : memref<8x32x128xf32, #tpu.memory_space<vmem>>, vector<1x16x128xf32>
      %119 = vector.shape_cast %118 : vector<1x16x128xf32> to vector<16x128xf32>
      %c8_i32_73 = arith.constant 8 : i32
      %120 = arith.muli %c8_i32_73, %c1_i32_68 : i32
      %c2_i32_74 = arith.constant 2 : i32
      %121 = arith.addi %120, %c2_i32_74 : i32
      %122 = arith.index_cast %121 : i32 to index
      %c0_75 = arith.constant 0 : index
      %123 = vector.load %arg6[%122, %c0_75] : memref<16x128xf32, #tpu.memory_space<vmem>>, vector<1x128xf32>
      %124 = vector.broadcast %123 : vector<1x128xf32> to vector<16x128xf32>
      %125 = arith.mulf %119, %124 : vector<16x128xf32>
      %126 = arith.addf %113, %125 : vector<16x128xf32>
      %c2_i32_76 = arith.constant 2 : i32
      %c0_i32_77 = arith.constant 0 : i32
      %c8_i32_78 = arith.constant 8 : i32
      %127 = arith.muli %c8_i32_78, %c0_i32_77 : i32
      %c16_i32_79 = arith.constant 16 : i32
      %128 = arith.subi %c16_i32_79, %127 : i32
      %129 = tpu.assume_multiple %128, 8 : i32
      %c3_80 = arith.constant 3 : index
      %130 = arith.index_cast %129 : i32 to index
      %c0_81 = arith.constant 0 : index
      %131 = vector.load %arg11[%c3_80, %130, %c0_81] : memref<8x32x128xf32, #tpu.memory_space<vmem>>, vector<1x16x128xf32>
      %132 = vector.shape_cast %131 : vector<1x16x128xf32> to vector<16x128xf32>
      %c8_i32_82 = arith.constant 8 : i32
      %133 = arith.muli %c8_i32_82, %c0_i32_77 : i32
      %c3_i32_83 = arith.constant 3 : i32
      %134 = arith.addi %133, %c3_i32_83 : i32
      %135 = arith.index_cast %134 : i32 to index
      %c0_84 = arith.constant 0 : index
      %136 = vector.load %arg6[%135, %c0_84] : memref<16x128xf32, #tpu.memory_space<vmem>>, vector<1x128xf32>
      %137 = vector.broadcast %136 : vector<1x128xf32> to vector<16x128xf32>
      %138 = arith.mulf %132, %137 : vector<16x128xf32>
      %139 = arith.addf %126, %138 : vector<16x128xf32>
      %c1_i32_85 = arith.constant 1 : i32
      %c8_i32_86 = arith.constant 8 : i32
      %140 = arith.muli %c8_i32_86, %c1_i32_85 : i32
      %c16_i32_87 = arith.constant 16 : i32
      %141 = arith.subi %c16_i32_87, %140 : i32
      %142 = tpu.assume_multiple %141, 8 : i32
      %c3_88 = arith.constant 3 : index
      %143 = arith.index_cast %142 : i32 to index
      %c0_89 = arith.constant 0 : index
      %144 = vector.load %arg11[%c3_88, %143, %c0_89] : memref<8x32x128xf32, #tpu.memory_space<vmem>>, vector<1x16x128xf32>
      %145 = vector.shape_cast %144 : vector<1x16x128xf32> to vector<16x128xf32>
      %c8_i32_90 = arith.constant 8 : i32
      %146 = arith.muli %c8_i32_90, %c1_i32_85 : i32
      %c3_i32_91 = arith.constant 3 : i32
      %147 = arith.addi %146, %c3_i32_91 : i32
      %148 = arith.index_cast %147 : i32 to index
      %c0_92 = arith.constant 0 : index
      %149 = vector.load %arg6[%148, %c0_92] : memref<16x128xf32, #tpu.memory_space<vmem>>, vector<1x128xf32>
      %150 = vector.broadcast %149 : vector<1x128xf32> to vector<16x128xf32>
      %151 = arith.mulf %145, %150 : vector<16x128xf32>
      %152 = arith.addf %139, %151 : vector<16x128xf32>
      %c2_i32_93 = arith.constant 2 : i32
      %c0_i32_94 = arith.constant 0 : i32
      %c8_i32_95 = arith.constant 8 : i32
      %153 = arith.muli %c8_i32_95, %c0_i32_94 : i32
      %c16_i32_96 = arith.constant 16 : i32
      %154 = arith.subi %c16_i32_96, %153 : i32
      %155 = tpu.assume_multiple %154, 8 : i32
      %c4_97 = arith.constant 4 : index
      %156 = arith.index_cast %155 : i32 to index
      %c0_98 = arith.constant 0 : index
      %157 = vector.load %arg11[%c4_97, %156, %c0_98] : memref<8x32x128xf32, #tpu.memory_space<vmem>>, vector<1x16x128xf32>
      %158 = vector.shape_cast %157 : vector<1x16x128xf32> to vector<16x128xf32>
      %c8_i32_99 = arith.constant 8 : i32
      %159 = arith.muli %c8_i32_99, %c0_i32_94 : i32
      %c4_i32_100 = arith.constant 4 : i32
      %160 = arith.addi %159, %c4_i32_100 : i32
      %161 = arith.index_cast %160 : i32 to index
      %c0_101 = arith.constant 0 : index
      %162 = vector.load %arg6[%161, %c0_101] : memref<16x128xf32, #tpu.memory_space<vmem>>, vector<1x128xf32>
      %163 = vector.broadcast %162 : vector<1x128xf32> to vector<16x128xf32>
      %164 = arith.mulf %158, %163 : vector<16x128xf32>
      %165 = arith.addf %152, %164 : vector<16x128xf32>
      %c1_i32_102 = arith.constant 1 : i32
      %c8_i32_103 = arith.constant 8 : i32
      %166 = arith.muli %c8_i32_103, %c1_i32_102 : i32
      %c16_i32_104 = arith.constant 16 : i32
      %167 = arith.subi %c16_i32_104, %166 : i32
      %168 = tpu.assume_multiple %167, 8 : i32
      %c4_105 = arith.constant 4 : index
      %169 = arith.index_cast %168 : i32 to index
      %c0_106 = arith.constant 0 : index
      %170 = vector.load %arg11[%c4_105, %169, %c0_106] : memref<8x32x128xf32, #tpu.memory_space<vmem>>, vector<1x16x128xf32>
      %171 = vector.shape_cast %170 : vector<1x16x128xf32> to vector<16x128xf32>
      %c8_i32_107 = arith.constant 8 : i32
      %172 = arith.muli %c8_i32_107, %c1_i32_102 : i32
      %c4_i32_108 = arith.constant 4 : i32
      %173 = arith.addi %172, %c4_i32_108 : i32
      %174 = arith.index_cast %173 : i32 to index
      %c0_109 = arith.constant 0 : index
      %175 = vector.load %arg6[%174, %c0_109] : memref<16x128xf32, #tpu.memory_space<vmem>>, vector<1x128xf32>
      %176 = vector.broadcast %175 : vector<1x128xf32> to vector<16x128xf32>
      %177 = arith.mulf %171, %176 : vector<16x128xf32>
      %178 = arith.addf %165, %177 : vector<16x128xf32>
      %c2_i32_110 = arith.constant 2 : i32
      %c0_i32_111 = arith.constant 0 : i32
      %c8_i32_112 = arith.constant 8 : i32
      %179 = arith.muli %c8_i32_112, %c0_i32_111 : i32
      %c16_i32_113 = arith.constant 16 : i32
      %180 = arith.subi %c16_i32_113, %179 : i32
      %181 = tpu.assume_multiple %180, 8 : i32
      %c5_114 = arith.constant 5 : index
      %182 = arith.index_cast %181 : i32 to index
      %c0_115 = arith.constant 0 : index
      %183 = vector.load %arg11[%c5_114, %182, %c0_115] : memref<8x32x128xf32, #tpu.memory_space<vmem>>, vector<1x16x128xf32>
      %184 = vector.shape_cast %183 : vector<1x16x128xf32> to vector<16x128xf32>
      %c8_i32_116 = arith.constant 8 : i32
      %185 = arith.muli %c8_i32_116, %c0_i32_111 : i32
      %c5_i32_117 = arith.constant 5 : i32
      %186 = arith.addi %185, %c5_i32_117 : i32
      %187 = arith.index_cast %186 : i32 to index
      %c0_118 = arith.constant 0 : index
      %188 = vector.load %arg6[%187, %c0_118] : memref<16x128xf32, #tpu.memory_space<vmem>>, vector<1x128xf32>
      %189 = vector.broadcast %188 : vector<1x128xf32> to vector<16x128xf32>
      %190 = arith.mulf %184, %189 : vector<16x128xf32>
      %191 = arith.addf %178, %190 : vector<16x128xf32>
      %c1_i32_119 = arith.constant 1 : i32
      %c8_i32_120 = arith.constant 8 : i32
      %192 = arith.muli %c8_i32_120, %c1_i32_119 : i32
      %c16_i32_121 = arith.constant 16 : i32
      %193 = arith.subi %c16_i32_121, %192 : i32
      %194 = tpu.assume_multiple %193, 8 : i32
      %c5_122 = arith.constant 5 : index
      %195 = arith.index_cast %194 : i32 to index
      %c0_123 = arith.constant 0 : index
      %196 = vector.load %arg11[%c5_122, %195, %c0_123] : memref<8x32x128xf32, #tpu.memory_space<vmem>>, vector<1x16x128xf32>
      %197 = vector.shape_cast %196 : vector<1x16x128xf32> to vector<16x128xf32>
      %c8_i32_124 = arith.constant 8 : i32
      %198 = arith.muli %c8_i32_124, %c1_i32_119 : i32
      %c5_i32_125 = arith.constant 5 : i32
      %199 = arith.addi %198, %c5_i32_125 : i32
      %200 = arith.index_cast %199 : i32 to index
      %c0_126 = arith.constant 0 : index
      %201 = vector.load %arg6[%200, %c0_126] : memref<16x128xf32, #tpu.memory_space<vmem>>, vector<1x128xf32>
      %202 = vector.broadcast %201 : vector<1x128xf32> to vector<16x128xf32>
      %203 = arith.mulf %197, %202 : vector<16x128xf32>
      %204 = arith.addf %191, %203 : vector<16x128xf32>
      %c2_i32_127 = arith.constant 2 : i32
      %c0_i32_128 = arith.constant 0 : i32
      %c8_i32_129 = arith.constant 8 : i32
      %205 = arith.muli %c8_i32_129, %c0_i32_128 : i32
      %c16_i32_130 = arith.constant 16 : i32
      %206 = arith.subi %c16_i32_130, %205 : i32
      %207 = tpu.assume_multiple %206, 8 : i32
      %c6_131 = arith.constant 6 : index
      %208 = arith.index_cast %207 : i32 to index
      %c0_132 = arith.constant 0 : index
      %209 = vector.load %arg11[%c6_131, %208, %c0_132] : memref<8x32x128xf32, #tpu.memory_space<vmem>>, vector<1x16x128xf32>
      %210 = vector.shape_cast %209 : vector<1x16x128xf32> to vector<16x128xf32>
      %c8_i32_133 = arith.constant 8 : i32
      %211 = arith.muli %c8_i32_133, %c0_i32_128 : i32
      %c6_i32_134 = arith.constant 6 : i32
      %212 = arith.addi %211, %c6_i32_134 : i32
      %213 = arith.index_cast %212 : i32 to index
      %c0_135 = arith.constant 0 : index
      %214 = vector.load %arg6[%213, %c0_135] : memref<16x128xf32, #tpu.memory_space<vmem>>, vector<1x128xf32>
      %215 = vector.broadcast %214 : vector<1x128xf32> to vector<16x128xf32>
      %216 = arith.mulf %210, %215 : vector<16x128xf32>
      %217 = arith.addf %204, %216 : vector<16x128xf32>
      %c1_i32_136 = arith.constant 1 : i32
      %c8_i32_137 = arith.constant 8 : i32
      %218 = arith.muli %c8_i32_137, %c1_i32_136 : i32
      %c16_i32_138 = arith.constant 16 : i32
      %219 = arith.subi %c16_i32_138, %218 : i32
      %220 = tpu.assume_multiple %219, 8 : i32
      %c6_139 = arith.constant 6 : index
      %221 = arith.index_cast %220 : i32 to index
      %c0_140 = arith.constant 0 : index
      %222 = vector.load %arg11[%c6_139, %221, %c0_140] : memref<8x32x128xf32, #tpu.memory_space<vmem>>, vector<1x16x128xf32>
      %223 = vector.shape_cast %222 : vector<1x16x128xf32> to vector<16x128xf32>
      %c8_i32_141 = arith.constant 8 : i32
      %224 = arith.muli %c8_i32_141, %c1_i32_136 : i32
      %c6_i32_142 = arith.constant 6 : i32
      %225 = arith.addi %224, %c6_i32_142 : i32
      %226 = arith.index_cast %225 : i32 to index
      %c0_143 = arith.constant 0 : index
      %227 = vector.load %arg6[%226, %c0_143] : memref<16x128xf32, #tpu.memory_space<vmem>>, vector<1x128xf32>
      %228 = vector.broadcast %227 : vector<1x128xf32> to vector<16x128xf32>
      %229 = arith.mulf %223, %228 : vector<16x128xf32>
      %230 = arith.addf %217, %229 : vector<16x128xf32>
      %c2_i32_144 = arith.constant 2 : i32
      %c0_i32_145 = arith.constant 0 : i32
      %c8_i32_146 = arith.constant 8 : i32
      %231 = arith.muli %c8_i32_146, %c0_i32_145 : i32
      %c16_i32_147 = arith.constant 16 : i32
      %232 = arith.subi %c16_i32_147, %231 : i32
      %233 = tpu.assume_multiple %232, 8 : i32
      %c7_148 = arith.constant 7 : index
      %234 = arith.index_cast %233 : i32 to index
      %c0_149 = arith.constant 0 : index
      %235 = vector.load %arg11[%c7_148, %234, %c0_149] : memref<8x32x128xf32, #tpu.memory_space<vmem>>, vector<1x16x128xf32>
      %236 = vector.shape_cast %235 : vector<1x16x128xf32> to vector<16x128xf32>
      %c8_i32_150 = arith.constant 8 : i32
      %237 = arith.muli %c8_i32_150, %c0_i32_145 : i32
      %c7_i32_151 = arith.constant 7 : i32
      %238 = arith.addi %237, %c7_i32_151 : i32
      %239 = arith.index_cast %238 : i32 to index
      %c0_152 = arith.constant 0 : index
      %240 = vector.load %arg6[%239, %c0_152] : memref<16x128xf32, #tpu.memory_space<vmem>>, vector<1x128xf32>
      %241 = vector.broadcast %240 : vector<1x128xf32> to vector<16x128xf32>
      %242 = arith.mulf %236, %241 : vector<16x128xf32>
      %243 = arith.addf %230, %242 : vector<16x128xf32>
      %c1_i32_153 = arith.constant 1 : i32
      %c8_i32_154 = arith.constant 8 : i32
      %244 = arith.muli %c8_i32_154, %c1_i32_153 : i32
      %c16_i32_155 = arith.constant 16 : i32
      %245 = arith.subi %c16_i32_155, %244 : i32
      %246 = tpu.assume_multiple %245, 8 : i32
      %c7_156 = arith.constant 7 : index
      %247 = arith.index_cast %246 : i32 to index
      %c0_157 = arith.constant 0 : index
      %248 = vector.load %arg11[%c7_156, %247, %c0_157] : memref<8x32x128xf32, #tpu.memory_space<vmem>>, vector<1x16x128xf32>
      %249 = vector.shape_cast %248 : vector<1x16x128xf32> to vector<16x128xf32>
      %c8_i32_158 = arith.constant 8 : i32
      %250 = arith.muli %c8_i32_158, %c1_i32_153 : i32
      %c7_i32_159 = arith.constant 7 : i32
      %251 = arith.addi %250, %c7_i32_159 : i32
      %252 = arith.index_cast %251 : i32 to index
      %c0_160 = arith.constant 0 : index
      %253 = vector.load %arg6[%252, %c0_160] : memref<16x128xf32, #tpu.memory_space<vmem>>, vector<1x128xf32>
      %254 = vector.broadcast %253 : vector<1x128xf32> to vector<16x128xf32>
      %255 = arith.mulf %249, %254 : vector<16x128xf32>
      %256 = arith.addf %243, %255 : vector<16x128xf32>
      %c2_i32_161 = arith.constant 2 : i32
      %c0_162 = arith.constant 0 : index
      %c0_163 = arith.constant 0 : index
      %257 = vector.load %arg10[%c0_162, %c0_163] : memref<16x128xf32, #tpu.memory_space<vmem>>, vector<16x128xf32>
      tpu.vector_store %arg10[%c0_162, %c0_163], %256 {strides = array<i32>} : memref<16x128xf32, #tpu.memory_space<vmem>>, vector<16x128xf32>,
      %258 = arith.cmpi eq, %5, %3 : i32
      %259 = arith.extui %258 : i1 to i32
      %c0_i32_164 = arith.constant 0 : i32
      %260 = arith.cmpi ne, %259, %c0_i32_164 : i32
      scf.if %260 {
        %c0_165 = arith.constant 0 : index
        %c0_166 = arith.constant 0 : index
        %c0_167 = arith.constant 0 : index
        %261 = vector.load %arg9[%c0_165, %c0_166, %c0_167] : memref<1x16x128xf32, #tpu.memory_space<vmem>>, vector<1x16x128xf32>
        %262 = vector.shape_cast %261 : vector<1x16x128xf32> to vector<16x128xf32>
        %263 = vector.shape_cast %256 : vector<16x128xf32> to vector<1x16x128xf32>
        tpu.vector_store %arg9[%c0_165, %c0_166, %c0_167], %263 {strides = array<i32>} : memref<1x16x128xf32, #tpu.memory_space<vmem>>, vector<1x16x128xf32>,
      } else {
      }
    } else {
    }
    return
  }
  func.func @transform_0(%arg0: i32, %arg1: i32, %arg2: i32, %arg3: i32, %arg4: memref<4xi32, #tpu.memory_space<smem>>, %arg5: memref<4xi32, #tpu.memory_space<smem>>) -> (i32, i32) {
    %c2_i32 = arith.constant 2 : i32
    %0 = arith.muli %arg0, %c2_i32 : i32
    %1 = arith.addi %0, %arg3 : i32
    %2 = arith.index_cast %1 : i32 to index
    %3 = memref.load %arg4[%2] : memref<4xi32, #tpu.memory_space<smem>>
    %4 = arith.index_cast %1 : i32 to index
    %5 = memref.load %arg5[%4] : memref<4xi32, #tpu.memory_space<smem>>
    %c0_i32 = arith.constant 0 : i32
    %6 = arith.maxsi %5, %c0_i32 : i32
    %7 = arith.subi %3, %6 : i32
    %c0_i32_0 = arith.constant 0 : i32
    return %7, %arg2 : i32, i32
  }
  func.func @transform_1(%arg0: i32, %arg1: i32, %arg2: i32, %arg3: i32, %arg4: memref<4xi32, #tpu.memory_space<smem>>, %arg5: memref<4xi32, #tpu.memory_space<smem>>) -> (i32, i32, i32) {
    %c2_i32 = arith.constant 2 : i32
    %0 = arith.muli %arg0, %c2_i32 : i32
    %1 = arith.addi %0, %arg3 : i32
    %2 = arith.index_cast %1 : i32 to index
    %3 = memref.load %arg5[%2] : memref<4xi32, #tpu.memory_space<smem>>
    %c0_i32 = arith.constant 0 : i32
    %4 = arith.maxsi %3, %c0_i32 : i32
    %c0_i32_0 = arith.constant 0 : i32
    return %arg1, %4, %arg2 : i32, i32, i32
  }
  func.func @transform_2(%arg0: i32, %arg1: i32, %arg2: i32, %arg3: i32, %arg4: memref<4xi32, #tpu.memory_space<smem>>, %arg5: memref<4xi32, #tpu.memory_space<smem>>) -> (i32, i32, i32) {
    %c2_i32 = arith.constant 2 : i32
    %0 = arith.muli %arg0, %c2_i32 : i32
    %1 = arith.addi %0, %arg3 : i32
    %2 = arith.index_cast %1 : i32 to index
    %3 = memref.load %arg5[%2] : memref<4xi32, #tpu.memory_space<smem>>
    %c0_i32 = arith.constant 0 : i32
    %4 = arith.maxsi %3, %c0_i32 : i32
    %c1_i32 = arith.constant 1 : i32
    %5 = arith.addi %4, %c1_i32 : i32
    %c0_i32_0 = arith.constant 0 : i32
    return %arg1, %5, %arg2 : i32, i32, i32
  }
  func.func @transform_3(%arg0: i32, %arg1: i32, %arg2: i32, %arg3: i32, %arg4: memref<4xi32, #tpu.memory_space<smem>>, %arg5: memref<4xi32, #tpu.memory_space<smem>>) -> (i32, i32, i32) {
    %c2_i32 = arith.constant 2 : i32
    %0 = arith.muli %arg0, %c2_i32 : i32
    %1 = arith.addi %0, %arg3 : i32
    %2 = arith.index_cast %1 : i32 to index
    %3 = memref.load %arg4[%2] : memref<4xi32, #tpu.memory_space<smem>>
    %c0_i32 = arith.constant 0 : i32
    return %arg1, %3, %arg2 : i32, i32, i32
  }
}

</mosaic_0001>

<bundles_post_ra>
// kernel: tpu_custom_call.1
= control target key start
LH: loop header
LB: loop body
LE: loop exit
PB: predicated region body
PF: predicated region fallthrough
CT: control target
= control target key end

     0   :  { %s1457_s18 = smov [#allocation5]   ;;  %s2126_s0 = inlined_call_operand.hbm [shape: s32[4], index: 0, kind: input, shape index: {}]   ;;  %s2127_s2 = inlined_call_operand.hbm [shape: f32[32,128], index: 2, kind: input, shape index: {}]   ;;  %s2128_s3 = inlined_call_operand.hbm [shape: f32[1,48,128], index: 3, kind: input, shape index: {}]   ;;  %s2129_s4 = inlined_call_operand.hbm [shape: f32[1,48,128], index: 4, kind: input, shape index: {}]   ;;  %s2130_s5 = inlined_call_operand.hbm [shape: f32[1,32,128], index: 5, kind: output, shape index: {}]   ;;  %s2131_s1 = inlined_call_operand.vmem [shape: s32[4], index: 1, kind: input, shape index: {}]  }
   0x1   :  { %2159 = sst [smem:[#allocation43_spill]] %s2128_s3  ;;  %s12_s23 = sshll.u32 %s2131_s1, 4  ;;  %s13_s23 = int_to_ptr.vmem [resolvable:$true] %s12_s23 }
   0x2   :  { %2160 = sst [smem:[#allocation44_spill]] %s2130_s5  ;;  %s1180_s24 = scalar_lea.vmem %s13_s23, 16 }
   0x3   :  { %11 = dma.hbm_to_smem %s2126_s0, 16, %s1457_s18, [#allocation4] }
   0x4   :  { %p1181_p0 = scmp.ne.s32.totalorder %s13_s23, %s1180_s24  ;;  %p1185_p1 = scmp.lt.s32.totalorder %s13_s23, %s13_s23 }
   0x5   :  { %p1186_p2 = scmp.lt.s32.totalorder %s1180_s24, %s1180_s24 }
   0x7   :  { %p1187_p3 = por %p1186_p2, %p1185_p1 }
   0x9   :  { %p1188_p4 = pnand %p1187_p3, %p1181_p0 }
   0xb   :  { %1191 = shalt.err (!%p1188_p4)  }
   0xc   :  { %s1458_s25 = smov [#allocation6]  }
   0xd   :  { %15 = dma.vmem_to_smem %s13_s23, 16, %s1458_s25, [#allocation4] }
   0xe   :  { %1371 = dma.done.wait [#allocation4], 32 }
   0xf   :  { %1372 = vsyncadd [#allocation4], 4294967264 }
  0x10   :  { %17 = sfence }
  0x11   :  { %18 = vsyncpa [#allocation8], 0 }
  0x12   :  { %20 = vsyncpa [#allocation8 + $0x1], 0 }
  0x13   :  { %21 = vsyncpa [#allocation11], 0 }
  0x14   :  { %23 = vsyncpa [#allocation11 + $0x1], 0 }
  0x15   :  { %24 = vsyncpa [#allocation9], 0 }
  0x16   :  { %26 = vsyncpa [#allocation9 + $0x1], 0  ;;  %s1504_s0 = smov 0   ;;  %s1506_s1 = smov 0  }
  0x17   :  { %s1508_s26 = smov 0   ;;  %s1510_s27 = smov 0  }
  0x18   :  { %s1512_s28 = smov 0   ;;  %s1514_s29 = smov 0  }
  0x19   :  { %s1516_s30 = smov 0   ;;  %s1518_s6 = smov 0  }
  0x1a   :  { %s1520_s7 = smov 0   ;;  %s1522_s8 = smov 0  }
  0x1b   :  { %s1524_s9 = smov 0   ;;  %s1526_s10 = smov 0  }
  0x1c   :  { %s1528_s11 = smov 0   ;;  %s1530_s12 = smov 0  }
  0x1d   :  { %s1532_s13 = smov 0   ;;  %s1534_s14 = smov 0  }
  0x1e   :  { %s1536_s15 = smov 0  }
  0x1f LB: > { %2161 = sst [smem:[#allocation28_spill]] %s1391_s0  ;;  %s47_s16 = sadd.s32 1, %s1447_s13  ;;  %s1455_s15 = sphi %s1536_s15, %s32_s15   ;;  %s1451_s14 = sphi %s1534_s14, %s2240_s14   ;;  %s1447_s13 = sphi %s1532_s13, %s2229_s13   ;;  %s1443_s12 = sphi %s1530_s12, %s2228_s12   ;;  %s1439_s11 = sphi %s1528_s11, %s2227_s11   ;;  %s1435_s10 = sphi %s1526_s10, %s2239_s10   ;;  %s1431_s9 = sphi %s1524_s9, %s2238_s9   ;;  %s1427_s8 = sphi %s1522_s8, %s2237_s8   ;;  %s1423_s7 = sphi %s1520_s7, %s2236_s7   ;;  %s1419_s6 = sphi %s1518_s6, %s2235_s6   ;;  %s1415_s30 = sphi %s1516_s30, %s2234_s30   ;;  %s1411_s29 = sphi %s1514_s29, %s2233_s29   ;;  %s1407_s28 = sphi %s1512_s28, %s2232_s28   ;;  %s1403_s27 = sphi %s1510_s27, %s2231_s27   ;;  %s1399_s26 = sphi %s1508_s26, %s2224_s26   ;;  %s1395_s1 = sphi %s1506_s1, %s2223_s1   ;;  %s1391_s0 = sphi %s1504_s0, %s2222_s0  }
  0x20   : > { %2162 = sst [smem:[#allocation29_spill]] %s1395_s1  ;;  %s58_s17 = sadd.s32 1, %s1451_s14 }
  0x21   : > { %2163 = sst [smem:[#allocation30_spill]] %s1399_s26  ;;  %p48_p5 = scmp.ge.s32.totalorder %s47_s16, 2 }
  0x22   : > { %2164 = sst [smem:[#allocation31_spill]] %s1423_s7  ;;  %s930_s18 = sshll.u32 %s1451_s14, 1 }
  0x23   : > { %2165 = sst [smem:[#allocation32_spill]] %s1439_s11  ;;  %s1591_s19 = sadd.s32 4294967295, %s1455_s15  }
  0x24   : > { %2166 = sst [smem:[#allocation33_spill]] %s1443_s12  ;;  %s1594_s20 = sadd.s32 %s1447_s13, %s930_s18 }
  0x25   : > { %2167 = sst [smem:[#allocation34_spill]] %s1447_s13  ;;  %s2242_s16 = smov (%p48_p5, %s47_s16), 0 }
  0x26   : > { %2168 = sst [smem:[#allocation35_spill]] %s1451_s14  ;;  %s2244_s17 = smov (!%p48_p5, %s58_s17), %s1451_s14 }
  0x27   : > { %2169 = sst [smem:[#allocation36_spill]] %s2242_s16  ;;  %p2147_p6 = scmp.eq.s32.totalorder %s1591_s19, 0 }
  0x28   : > { %s106_s21 = sld [smem:[#allocation6 + %s1594_s20]]  ;;  %p60_p7 = scmp.ge.s32.totalorder %s2244_s17, 2 }
  0x29   : > { %s929_s22 = sadd.s32 4294967294, %s1455_s15   ;;  %p134_p8 = scmp.ne.s32.totalorder %s1419_s6, %s1415_s30 }
  0x2a   : > { %s2246_s17 = smov (%p60_p7, %s2244_s17), 0  ;;  %p2146_p9 = scmp.eq.s32.totalorder %s1455_s15, 0 }
  0x2b   : > { %2170 = sst [smem:[#allocation37_spill]] %s2246_s17  ;;  %p1608_p10 = por %p134_p8, %p2147_p6 }
  0x2c   : > { %s931_s24 = sshll.u32 %s2246_s17, 1  ;;  %s188_s25 = sld [smem:[#allocation5 + %s1594_s20]] }
  0x2d   : > { %s2171_s23 = scalar_select %p1608_p10, 1, 0 }
  0x2e   : > { %s1615_s18 = sadd.s32 %s931_s24, %s2242_s16  ;;  %p107_p11 = scmp.gt.s32.totalorder %s106_s21, 0 }
  0x2f   : > { %2172 = sst [smem:[#allocation38_spill]] %s2171_s23  ;;  %p128_p12 = scmp.ne.s32.totalorder %s1423_s7, %s1419_s6 }
  0x30   : > { %s111_s30 = sld [smem:[#allocation6 + %s1615_s18]]  ;;  %s2248_s21 = smov (!%p107_p11, %s106_s21), 0 }
  0x31   : > { %s191_s14 = sld [smem:[#allocation5 + %s1615_s18]]  ;;  %p209_p13 = scmp.ne.s32.totalorder %s1399_s26, %s1395_s1 }
  0x32   : > { %p210_p0 = scmp.eq.s32.totalorder %s1591_s19, 3  ;;  %p215_p1 = scmp.ne.s32.totalorder %s1395_s1, %s1391_s0 }
  0x33   : > { %p216_p2 = scmp.eq.s32.totalorder %s929_s22, 3  ;;  %s121_s17 = sadd.s32 1, %s1423_s7 }
  0x34   : > { %p1627_p3 = por %p210_p0, %p209_p13  ;;  %p1637_p7 = por %p128_p12, %p2146_p9 }
  0x35   : > { %p1631_p5 = por %p216_p2, %p215_p1  ;;  %s199_s22 = sadd.s32 1, %s1399_s26 }
  0x36   : > { %s2173_s24 = scalar_select %p1627_p3, 1, 0 }
  0x37   : > { %p112_p4 = scmp.gt.s32.totalorder %s111_s30, 0  ;;  %s193_s0 = ssub.s32 %s188_s25, %s191_s14 }
  0x38   : > { %2174 = sst [smem:[#allocation39_spill]] %s2173_s24  ;;  %p2145_p8 = scmp.lt.s32.totalorder %s1455_s15, 4 }
  0x39   : > { %s2175_s16 = scalar_select %p1631_p5, 1, 0 }
  0x3a   : > { %s2250_s30 = smov (!%p112_p4, %s111_s30), 0  ;;  %p197_p11 = scmp.eq.s32.totalorder %s193_s0, 0 }
  0x3b   : > { %2176 = sst [smem:[#allocation40_spill]] %s2175_s16  ;;  %s115_s5 = ssub.s32 %s2248_s21, %s2250_s30 }
  0x3c   : > { %p119_p13 = scmp.eq.s32.totalorder %s115_s5, 0  ;;  %s267_s11 = sand.u32 1, %s1423_s7  }
  0x3d   : > { %s1644_s16 = scalar_select %p197_p11, %s1399_s26, %s199_s22  }
  0x3e   : > { %s1647_s24 = scalar_select %p119_p13, %s1423_s7, %s121_s17  }
  0x3f   : > { %2178 = sst [smem:[#allocation41_spill]] %s1644_s16  ;;  %p1654_p12 = pnand %p2145_p8, %p1637_p7 }
  0x40   : > { %2179 = sst [smem:[#allocation42_spill]] %s1647_s24  ;;  %s944_s12 = sshll.u32 %s267_s11, 4 }
  0x41   : > { %p952_p0 = scmp.ge.s32.totalorder %s1455_s15, 1  ;;  %p322_p1 = scmp.lt.s32.totalorder %s1455_s15, 5 }
  0x42   : > { %s992_s14 = scalar_select %p1637_p7, [#allocation6], [#allocation16] }
  0x43   : > { %s993_s0 = scalar_select %p1637_p7, %s1594_s20, 0 }
  0x44   : > { %s2252_s14 = smov (!%p2145_p8, %s992_s14), [#allocation21]  ;;  %s265_s5 = sand.u32 1, %s1455_s15  }
  0x45   : > { %s2254_s0 = smov (!%p2145_p8, %s993_s0), 0  ;;  %s269_s21 = scalar_lea.vmem [#allocation10], %s944_s12 }
  0x46   : > { %s272_s17 = sld [smem:[%s2252_s14 + %s2254_s0]]  ;;  %s284_s25 = sshll.u32 %s269_s21, 4  ;;  %s1674_s25 = int_to_ptr.vmem [resolvable:$true] %s284_s25 }
  0x47   : > { %p1670_p2 = pnand %p952_p0, %p322_p1  ;;  %s1677_s11 = sld [smem:[#allocation6 + %s1594_s20]] }
  0x48   : > { %s1680_s22 = sld [smem:[#allocation5 + %s1594_s20]]  ;;  %s1690_s14 = scalar_lea.sflag [#allocation11], %s265_s5 }
  0x49   : > { %s2181_s30 = scalar_select %p1670_p2, 1, 0 }
  0x4a   : > { %s2182_s3 = sld [smem:[#allocation43_spill]]  ;;  %p1194_p11 = pneg %p1654_p12 }
  0x4b   : > { %s1688_s12 = sld [smem:[#allocation6 + %s1615_s18]] }
  0x4c   : > { %p273_p4 = scmp.gt.s32.totalorder %s272_s17, 0 }
  0x4e   : > { %s2256_s17 = smov (!%p273_p4, %s272_s17), 0 }
  0x4f   : > { %s984_s13 = sshll.u32 %s2256_s17, 8 }
  0x50   : > { %s1685_s16 = scalar_lea.hbm %s2182_s3, %s984_s13  ;;  %s1197_s26 = scalar_lea.hbm %s2182_s3, 768 }
  0x51   : > { %s1192_s0 = scalar_lea.hbm %s1685_s16, 256  ;;  %p1198_p1 = scmp.lt.s32.totalorder %s1685_s16, %s2182_s3 }
  0x52   : > { %p1193_p7 = scmp.ne.s32.totalorder %s1685_s16, %s1192_s0  ;;  %p1199_p4 = scmp.lt.s32.totalorder %s1197_s26, %s1192_s0 }
  0x54   : > { %p1195_p13 = pnand %p1194_p11, %p1193_p7  ;;  %p1200_p8 = por %p1199_p4, %p1198_p1 }
  0x56   : > { %p1196_p0 = pneg %p1195_p13 }
  0x58   : > { %p1201_p9 = pnand %p1200_p8, %p1196_p0 }
  0x5a   : > { %1204 = shalt.err (!%p1201_p9)
}
  0x5b   : > { %s1205_s5 = scalar_lea.vmem %s1674_s25, 256  ;;  %s1459_s13 = smov [#allocation10]  }
  0x5c   : > { %p1206_p6 = scmp.ne.s32.totalorder %s1674_s25, %s1205_s5  ;;  %s1210_s23 = sshll.u32 %s1459_s13, 4  ;;  %s1211_s23 = int_to_ptr.vmem [resolvable:$false] %s1210_s23 }
  0x5d   : > { %s1212_s17 = scalar_lea.vmem %s1211_s23, 512  ;;  %p1213_p13 = scmp.lt.s32.totalorder %s1674_s25, %s1211_s23 }
  0x5e   : > { %p1208_p5 = pnand %p1206_p6, %p1194_p11  ;;  %p1214_p3 = scmp.lt.s32.totalorder %s1212_s17, %s1205_s5 }
  0x60   : > { %p1209_p7 = pneg %p1208_p5  ;;  %p1215_p10 = por %p1214_p3, %p1213_p13 }
  0x62   : > { %p1216_p2 = pnand %p1215_p10, %p1209_p7 }
  0x64   : > { %1219 = shalt.err (!%p1216_p2)
}
  0x65   : > { %s2152_s26 = smov 128   ;;  %s2154_s23 = smov 8  }
  0x66   : > { %1017 = dma.hbm_to_vmem [thread:$0]  (!%p1654_p12), %s1685_s16, 256, %s1674_s25, %s1690_s14, %s2152_s26, %s2152_s26, %s2154_s23  }
  0x67   : > { %p94_p6 = scmp.ne.s32.totalorder %s1431_s9, %s1427_s8  ;;  %s71_s0 = sld [smem:[#allocation5 + %s1615_s18]] }
  0x68   : > { %p88_p9 = scmp.ne.s32.totalorder %s1435_s10, %s1431_s9  ;;  %p66_p10 = scmp.gt.s32.totalorder %s1677_s11, 0 }
  0x69   : > { %p2183_p3 = scmp.eq.s32.totalorder %s1591_s19, 0  ;;  %s81_s7 = sadd.s32 1, %s1435_s10 }
  0x6a   : > { %s2258_s11 = smov (!%p66_p10, %s1677_s11), 0  ;;  %p73_p8 = scmp.gt.s32.totalorder %s1688_s12, 0 }
  0x6b   : > { %p1722_p5 = por %p2183_p3, %p94_p6  ;;  %p2185_p2 = scmp.eq.s32.totalorder %s1455_s15, 0 }
  0x6c   : > { %s68_s8 = ssub.s32 %s1680_s22, %s2258_s11  ;;  %s236_s16 = sand.u32 1, %s1435_s10  }
  0x6d   : > { %s2184_s21 = scalar_select %p1722_p5, 1, 0 }
  0x6e   : > { %p1731_p12 = por %p2185_p2, %p88_p9  ;;  %s2260_s12 = smov (!%p73_p8, %s1688_s12), 0 }
  0x6f   : > { %s75_s24 = ssub.s32 %s71_s0, %s2260_s12  ;;  %s940_s13 = sshll.u32 %s236_s16, 4 }
  0x70   : > { %s987_s25 = scalar_select %p1731_p12, [#allocation5], [#allocation14] }
  0x71   : > { %s76_s5 = ssub.s32 %s68_s8, %s75_s24  ;;  %p2187_p0 = scmp.lt.s32.totalorder %s1455_s15, 4 }
  0x72   : > { %p79_p11 = scmp.eq.s32.totalorder %s76_s5, 0  ;;  %s146_s24 = sld [smem:[#allocation6 + %s1594_s20]] }
  0x73   : > { %p1746_p1 = pnand %p2187_p0, %p1731_p12  ;;  %p2189_p4 = pmov %p2187_p0 }
  0x74   : > { %s988_s11 = scalar_select %p1731_p12, %s1594_s20, 0 }
  0x75   : > { %s1754_s22 = scalar_select %p79_p11, %s1435_s10, %s81_s7  }
  0x76   : > { %s2262_s25 = smov (!%p2189_p4, %s987_s25), [#allocation19]  ;;  %p2190_p7 = pmov %p2187_p0 }
  0x77   : > { %s989_s12 = scalar_select %p1731_p12, [#allocation6], [#allocation15] }
  0x78   : > { %s2264_s11 = smov (!%p2190_p7, %s988_s11), 0  ;;  %p2191_p13 = pmov %p2187_p0 }
  0x79   : > { %s243_s0 = sld [smem:[%s2262_s25 + %s2264_s11]]  ;;  %s240_s26 = scalar_lea.vmem [#allocation7], %s940_s13 }
  0x7a   : > { %s2266_s12 = smov (!%p2191_p13, %s989_s12), [#allocation20]  ;;  %s1766_s5 = sld [smem:[#allocation6 + %s1615_s18]] }
  0x7b   : > { %s244_s8 = sld [smem:[%s2266_s12 + %s2264_s11]]  ;;  %s255_s7 = sshll.u32 %s240_s26, 4  ;;  %s1776_s7 = int_to_ptr.vmem [resolvable:$true] %s255_s7 }
  0x7c   : > { %p176_p6 = scmp.ne.s32.totalorder %s1407_s28, %s1403_s27  ;;  %p2192_p9 = pmov %p2183_p3 }
  0x7d   : > { %p147_p8 = scmp.gt.s32.totalorder %s146_s24, 0  ;;  %p170_p2 = scmp.ne.s32.totalorder %s1411_s29, %s1407_s28 }
  0x7e   : > { %p1772_p10 = por %p176_p6, %p2192_p9  ;;  %p2194_p11 = scmp.eq.s32.totalorder %s1455_s15, 0 }
  0x7f   : > { %s2270_s24 = smov (!%p147_p8, %s146_s24), 0  ;;  %s1797_s12 = scalar_lea.sflag [#allocation8], %s236_s16 }
  0x80   : > { %s2193_s23 = scalar_select %p1772_p10, 1, 0 }
  0x81   : > { %p245_p3 = scmp.gt.s32.totalorder %s244_s8, 0  ;;  %p1785_p0 = por %p170_p2, %p2194_p11 }
  0x82   : > { %p1222_p7 = pneg %p1746_p1  ;;  %s1225_s3 = scalar_lea.hbm %s2127_s2, 512 }
  0x83   : > { %s2268_s8 = smov (!%p245_p3, %s244_s8), 0 }
  0x84   : > { %s247_s18 = ssub.s32 %s243_s0, %s2268_s8 }
  0x85   : > { %s983_s1 = sshll.u32 %s247_s18, 8 }
  0x86   : > { %s2195_s27 = scalar_select %p1785_p0, 1, 0 }
  0x87   : > { %s1792_s13 = scalar_lea.hbm %s2127_s2, %s983_s1 }
  0x88   : > { %s1220_s0 = scalar_lea.hbm %s1792_s13, 256  ;;  %p1226_p9 = scmp.lt.s32.totalorder %s1792_s13, %s2127_s2 }
  0x89   : > { %p1221_p4 = scmp.ne.s32.totalorder %s1792_s13, %s1220_s0  ;;  %p1227_p3 = scmp.lt.s32.totalorder %s1225_s3, %s1220_s0 }
  0x8b   : > { %p1223_p13 = pnand %p1222_p7, %p1221_p4  ;;  %p1228_p8 = por %p1227_p3, %p1226_p9 }
  0x8d   : > { %p1224_p6 = pneg %p1223_p13 }
  0x8f   : > { %p1229_p2 = pnand %p1228_p8, %p1224_p6 }
  0x91   : > { %1232 = shalt.err (!%p1229_p2)
}
  0x92   : > { %s1233_s16 = scalar_lea.vmem %s1776_s7, 256  ;;  %s1462_s25 = smov [#allocation7]  }
  0x93   : > { %p1234_p11 = scmp.ne.s32.totalorder %s1776_s7, %s1233_s16  ;;  %s1238_s11 = sshll.u32 %s1462_s25, 4  ;;  %s1239_s11 = int_to_ptr.vmem [resolvable:$false] %s1238_s11 }
  0x94   : > { %s1240_s8 = scalar_lea.vmem %s1239_s11, 512  ;;  %p1241_p13 = scmp.lt.s32.totalorder %s1776_s7, %s1239_s11 }
  0x95   : > { %p1236_p12 = pnand %p1234_p11, %p1222_p7  ;;  %p1242_p10 = scmp.lt.s32.totalorder %s1240_s8, %s1233_s16 }
  0x97   : > { %p1237_p4 = pneg %p1236_p12  ;;  %p1243_p5 = por %p1242_p10, %p1241_p13 }
  0x99   : > { %p1244_p0 = pnand %p1243_p5, %p1237_p4 }
  0x9b   : > { %1247 = shalt.err (!%p1244_p0)
}
  0x9c   : > { %s2196_s3 = smov 8   ;;  %s2197_s0 = smov 128  }
  0x9d   : > { %1012 = dma.hbm_to_vmem [thread:$0]  (!%p1746_p1), %s1792_s13, 256, %s1776_s7, %s1797_s12, %s2197_s0, %s2197_s0, %s2196_s3  }
  0x9e   : > { %p2198_p5 = scmp.gt.s32.totalorder %s1766_s5, 0  ;;  %p2199_p10 = scmp.ne.s32.totalorder %s2195_s27, 0 }
  0x9f   : > { %s163_s18 = sadd.s32 1, %s1411_s29  ;;  %s2200_s26 = sadd.s32 1, %s2270_s24 }
  0xa0   : > { %s2272_s5 = smov (!%p2198_p5, %s1766_s5), 0  ;;  %s296_s16 = sand.u32 1, %s1411_s29  }
  0xa1   : > { %s995_s17 = scalar_select %p2199_p10, [#allocation6], [#allocation17] }
  0xa2   : > { %s155_s11 = sadd.s32 1, %s2272_s5  ;;  %p2201_p0 = scmp.lt.s32.totalorder %s1455_s15, 4 }
  0xa3   : > { %s157_s1 = ssub.s32 %s2200_s26, %s155_s11  ;;  %s2274_s20 = smov (!%p2199_p10, %s1594_s20), 0 }
  0xa4   : > { %p161_p12 = scmp.eq.s32.totalorder %s157_s1, 0  ;;  %p1834_p7 = pnand %p2201_p0, %p2199_p10 }
  0xa5   : > { %p2203_p1 = pmov %p2201_p0  ;;  %p2204_p6 = pmov %p2201_p0 }
  0xa6   : > { %s1842_s7 = scalar_select %p161_p12, %s1411_s29, %s163_s18  }
  0xa7   : > { %s2276_s17 = smov (!%p2203_p1, %s995_s17), [#allocation22]  ;;  %s2278_s20 = smov (!%p2204_p6, %s2274_s20), 0 }
  0xa8   : > { %s301_s5 = sld [smem:[%s2276_s17 + %s2278_s20]]  ;;  %s948_s24 = sshll.u32 %s296_s16, 4 }
  0xa9   : > { %s298_s13 = scalar_lea.vmem [#allocation12], %s948_s24  ;;  %p1250_p8 = pneg %p1834_p7 }
  0xaa   : > { %s314_s12 = sshll.u32 %s298_s13, 4  ;;  %s1253_s16 = scalar_lea.hbm %s2129_s4, 768  ;;  %s1848_s12 = int_to_ptr.vmem [resolvable:$true] %s314_s12 }
  0xae   : > { %p302_p9 = scmp.gt.s32.totalorder %s301_s5, 0 }
  0xb0   : > { %s2280_s5 = smov (!%p302_p9, %s301_s5), 0 }
  0xb1   : > { %s985_s8 = sshll.u32 %s2280_s5, 8 }
  0xb2   : > { %s820_s27 = scalar_lea.hbm %s2129_s4, %s985_s8 }
  0xb3   : > { %s1853_s1 = scalar_lea.hbm %s820_s27, 256  ;;  %s1276_s18 = scalar_lea.hbm %s820_s27, 512 }
  0xb4   : > { %p1249_p3 = scmp.ne.s32.totalorder %s1853_s1, %s1276_s18  ;;  %p1254_p4 = scmp.lt.s32.totalorder %s1853_s1, %s2129_s4 }
  0xb5   : > { %p1255_p13 = scmp.lt.s32.totalorder %s1253_s16, %s1276_s18 }
  0xb6   : > { %p1251_p2 = pnand %p1250_p8, %p1249_p3 }
  0xb7   : > { %p1256_p5 = por %p1255_p13, %p1254_p4 }
  0xb8   : > { %p1252_p11 = pneg %p1251_p2 }
  0xba   : > { %p1257_p10 = pnand %p1256_p5, %p1252_p11 }
  0xbc   : > { %1260 = shalt.err (!%p1257_p10)
}
  0xbd   : > { %s1261_s13 = scalar_lea.vmem %s1848_s12, 256  ;;  %s1463_s8 = smov [#allocation12]  }
  0xbe   : > { %p1262_p12 = scmp.ne.s32.totalorder %s1848_s12, %s1261_s13  ;;  %s1266_s11 = sshll.u32 %s1463_s8, 4  ;;  %s1267_s11 = int_to_ptr.vmem [resolvable:$false] %s1266_s11 }
  0xbf   : > { %s1268_s26 = scalar_lea.vmem %s1267_s11, 512  ;;  %p1269_p6 = scmp.lt.s32.totalorder %s1848_s12, %s1267_s11 }
  0xc0   : > { %p1264_p0 = pnand %p1262_p12, %p1250_p8  ;;  %p1270_p9 = scmp.lt.s32.totalorder %s1268_s26, %s1261_s13 }
  0xc2   : > { %p1265_p1 = pneg %p1264_p0  ;;  %p1271_p3 = por %p1270_p9, %p1269_p6 }
  0xc4   : > { %p1272_p2 = pnand %p1271_p3, %p1265_p1 }
  0xc6   : > { %1275 = shalt.err (!%p1272_p2)
}
  0xc7   : > { %1022 = dma.hbm_to_vmem [thread:$0]  (!%p1834_p7), %s1853_s1, 256, %s1848_s12, %s1690_s14, %s2197_s0, %s2197_s0, %s2196_s3  }
  0xc8   : > { %p2205_p8 = scmp.ne.s32.totalorder %s2181_s30, 0 }
  0xc9   : > { %s328_s27 = sand.u32 (!%p2205_p8), 1, %s1431_s9   ;;  %p2206_p11 = scmp.ne.s32.totalorder (!%p2205_p8), %s2184_s21, 0 }
  0xca   : > { %326 = sbr.rel (%p2205_p8) target bundleno = 323 (0x143), region = 32  ;;  %s953_s18 = sshll.u32 (!%p2205_p8), %s328_s27, 4 }
  0xcb   : > { %s329_s20 = scalar_lea.sflag (!%p2205_p8), [#allocation8], %s328_s27  ;;  %s1879_s17 = scalar_lea.vmem (!%p2205_p8), [#allocation7], %s953_s18 }
  0xcf   : > { %1374 = dma.done.wait (%p2206_p11), %s329_s20, 256  }
  0xd0   : > { %1376 = vsyncadd (%p2206_p11), %s329_s20, 4294967040  ;;  %s2207_s25 = sld [smem:[#allocation38_spill]]  ;;  %s337_s16 = sand.u32 1, %s1591_s19  }
  0xd1   : > { %s339_s14 = sand.u32 1, %s1419_s6   ;;  %s338_s30 = scalar_lea.sflag [#allocation11], %s337_s16 }
  0xd2   : > { %s1887_s3 = sshll.u32 %s339_s14, 4 }
  0xd3   : > { %s341_s0 = scalar_lea.vmem [#allocation10], %s1887_s3 }
  0xd6   : > { %p2208_p7 = scmp.ne.s32.totalorder %s2207_s25, 0 }
  0xd8   : > { %1378 = dma.done.wait (%p2208_p7), %s338_s30, 256  }
  0xd9   : > { %1380 = vsyncadd (%p2208_p7), %s338_s30, 4294967040  ;;  %s348_s12 = sand.u32 1, %s1407_s28   ;;  %p2209_p4 = scmp.ne.s32.totalorder %s2193_s23, 0 }
  0xda   : > { %s955_s21 = sshll.u32 %s348_s12, 4 }
  0xdb   : > { %s350_s1 = scalar_lea.vmem [#allocation12], %s955_s21 }
  0xdc   : > { %1382 = dma.done.wait (%p2209_p4), %s338_s30, 256  }
  0xdd   : > { %1384 = vsyncadd (%p2209_p4), %s338_s30, 4294967040  ;;  %s2210_s19 = sld [smem:[#allocation33_spill]] }
  0xde   : > { %s2211_s5 = sld [smem:[#allocation29_spill]] }
  0xdf   : > { %s2212_s24 = sld [smem:[#allocation32_spill]] }
  0xe3   : > { %s957_s13 = sshll.u32 %s2210_s19, 1 }
  0xe4   : > { %s380_s8 = sand.u32 1, %s2211_s5  }
  0xe5   : > { %s1902_s11 = sadd.s32 %s2212_s24, %s957_s13  ;;  %s956_s26 = sshll.u32 %s380_s8, 4 }
  0xe6   : > { %s1907_s27 = sld [smem:[#allocation5 + %s1902_s11]]  ;;  %s1912_s20 = scalar_lea.vmem [#allocation13], %s956_s26 }
  0xe7   : > { %s1910_s18 = sld [smem:[#allocation6 + %s1902_s11]] }
  0xed   : > { %p958_p13 = scmp.lt.s32.totalorder %s1910_s18, 0 }
  0xee   : > { %p959_p5 = scmp.ne.s32.totalorder (!%p958_p13), %s1910_s18, 0 }
  0xef   : > { %415 = sbr.rel (%p958_p13) target bundleno = 292 (0x124), region = 48 }
  0xf4   : > { %419 = sbr.rel (%p959_p5) target bundleno = 251 (0xfb), region = 52 }
  0xf9   : > { %v1464_v0 = vmov 0.0  }
  0xfa   : > { %420 = vst [vmem:[#allocation2] sm:$0xff] %v1464_v0  ;;  %421 = vst [vmem:[#allocation2 + $0x8] sm:$0xff] %v1464_v0 }
  0xfb PF: > { %v434_v1 = vlaneseq  ;;  %v1916_v2 = vld [vmem:[%s341_s0 + $0x8] sm:$0xff]  ;;  %v1918_v3 = vld [vmem:[%s350_s1] sm:$0xff]  ;;  %p976_p10 = scmp.ne.s32.totalorder %s1910_s18, %s1907_s27 }
  0xfc   : > { %v1922_v5 = vld [vmem:[%s350_s1 + $0x8] sm:$0xff]  ;;  %v1924_v6 = vld [vmem:[%s341_s0] sm:$0xff]  ;;  %v431_v7 = vrot.slane %v1916_v2, 7  ;;  %v432_v8 = vrot.slane %v1918_v3, 7  ;;  %v447_v13 = vrot.slane %v1916_v2, 6  ;;  %v448_v14 = vrot.slane %v1918_v3, 6 }
  0xfd   : > { %v1920_v4 = vshrl.u32 %v434_v1, 7  ;;  %v433_v9 = vrot.slane %v1922_v5, 7  ;;  %v430_v10 = vrot.slane %v1924_v6, 7  ;;  %v960_v11 = vld [vmem:[%s1879_s17] ss:$0 sm:$0xff]  ;;  %v446_v12 = vrot.slane %v1924_v6, 6 }
  0xfe   : > { %v961_v16 = vld [vmem:[%s1879_s17 + $0x8] ss:$0 sm:$0xff]  ;;  %v449_v18 = vrot.slane %v1922_v5, 6  ;;  %v460_v19 = vrot.slane %v1924_v6, 5  ;;  %v461_v20 = vrot.slane %v1916_v2, 5  ;;  %v540_v24 = vmul.f32 %v960_v11, %v1918_v3 }
  0xff   : > { %vm436_vm0 = vcmp.lt.s32.totalorder %v1920_v4, 1  ;;  %v962_v22 = vld [vmem:[%s1879_s17 + $0x1] ss:$0 sm:$0xff]  ;;  %vm450_vm1 = vcmp.lt.s32.totalorder %v1920_v4, 2  ;;  %v541_v25 = vmul.f32 %v960_v11, %v1922_v5  ;;  %v462_v27 = vrot.slane %v1918_v3, 5 }
 0x100   : > { %v438_v17 = vsel %vm436_vm0, %v431_v7, %v432_v8  ;;  %v437_v23 = vsel %vm436_vm0, %v432_v8, %v433_v9  ;;  %v439_v26 = vsel %vm436_vm0, %v430_v10, %v431_v7  ;;  %v463_v28 = vrot.slane %v1922_v5, 5  ;;  %v963_v30 = vld [vmem:[%s1879_s17 + $0x9] ss:$0 sm:$0xff]  ;;  %v964_v38 = vld [vmem:[%s1879_s17 + $0x2] ss:$0 sm:$0xff] }
 0x101   : > { %v530_v15 = vld [vmem:[#allocation2] sm:$0xff]  ;;  %v531_v21 = vld [vmem:[#allocation2 + $0x8] sm:$0xff]  ;;  %v552_v29 = vmul.f32 %v961_v16, %v1916_v2  ;;  %v553_v33 = vmul.f32 %v961_v16, %v1918_v3  ;;  %v565_v34 = vmul.f32 %v962_v22, %v438_v17  ;;  %v451_v35 = vsel %vm450_vm1, %v448_v14, %v449_v18 }
 0x102   : > { %v542_v31 = vadd.f32 %v540_v24, %v530_v15  ;;  %v543_v32 = vadd.f32 %v541_v25, %v531_v21  ;;  %v452_v36 = vsel %vm450_vm1, %v447_v13, %v448_v14  ;;  %vm464_vm2 = vcmp.lt.s32.totalorder %v1920_v4, 3  ;;  %v965_v46 = vld [vmem:[%s1879_s17 + $0xa] ss:$0 sm:$0xff]  ;;  %v966_v55 = vld [vmem:[%s1879_s17 + $0x3] ss:$0 sm:$0xff] }
 0x103   : > { %v566_v37 = vmul.f32 %v962_v22, %v437_v23  ;;  %v578_v41 = vmul.f32 %v963_v30, %v439_v26  ;;  %v579_v42 = vmul.f32 %v963_v30, %v438_v17  ;;  %v453_v43 = vsel %vm450_vm1, %v446_v12, %v447_v13  ;;  %v967_v0 = vld [vmem:[%s1879_s17 + $0xb] ss:$0 sm:$0xff]  ;;  %v968_v13 = vld [vmem:[%s1879_s17 + $0x4] ss:$0 sm:$0xff]  ;;  %v969_v21 = vld [vmem:[%s1879_s17 + $0xc] ss:$0 sm:$0xff] }
 0x104   : > { %v554_v39 = vadd.f32 %v552_v29, %v542_v31  ;;  %v555_v40 = vadd.f32 %v553_v33, %v543_v32  ;;  %v475_v44 = vrot.slane %v1916_v2, 4  ;;  %v476_v45 = vrot.slane %v1918_v3, 4  ;;  %v970_v29 = vld [vmem:[%s1879_s17 + $0x5] ss:$0 sm:$0xff] }
 0x105   : > { %vm478_vm3 = vcmp.lt.s32.totalorder %v1920_v4, 4  ;;  %v591_v49 = vmul.f32 %v964_v38, %v452_v36  ;;  %v592_v50 = vmul.f32 %v964_v38, %v451_v35  ;;  %v465_v51 = vsel %vm464_vm2, %v462_v27, %v463_v28  ;;  %v971_v38 = vld [vmem:[%s1879_s17 + $0xd] ss:$0 sm:$0xff] }
 0x106   : > { %v567_v47 = vadd.f32 %v565_v34, %v554_v39  ;;  %v568_v48 = vadd.f32 %v566_v37, %v555_v40  ;;  %v466_v52 = vsel %vm464_vm2, %v461_v20, %v462_v27  ;;  %v467_v53 = vsel %vm464_vm2, %v460_v19, %v461_v20 }
 0x107   : > { %v477_v54 = vrot.slane %v1922_v5, 4  ;;  %v604_v58 = vmul.f32 %v965_v46, %v453_v43  ;;  %v605_v59 = vmul.f32 %v965_v46, %v452_v36  ;;  %v474_v60 = vrot.slane %v1924_v6, 4  ;;  %v972_v46 = vld [vmem:[%s1879_s17 + $0x6] ss:$0 sm:$0xff] }
 0x108   : > { %v580_v56 = vadd.f32 %v578_v41, %v567_v47  ;;  %v581_v57 = vadd.f32 %v579_v42, %v568_v48  ;;  %v480_v61 = vsel %vm478_vm3, %v475_v44, %v476_v45  ;;  %v488_v62 = vrot.slane %v1924_v6, 3 }
 0x109   : > { %v489_v63 = vrot.slane %v1916_v2, 3  ;;  %v617_v8 = vmul.f32 %v966_v55, %v466_v52  ;;  %v618_v9 = vmul.f32 %v966_v55, %v465_v51  ;;  %v479_v10 = vsel %vm478_vm3, %v476_v45, %v477_v54 }
 0x10a   : > { %v593_v1 = vadd.f32 %v591_v49, %v580_v56  ;;  %v594_v7 = vadd.f32 %v592_v50, %v581_v57  ;;  %v490_v11 = vrot.slane %v1918_v3, 3  ;;  %v491_v12 = vrot.slane %v1922_v5, 3  ;;  %v974_v57 = vld [vmem:[%s1879_s17 + $0x7] ss:$0 sm:$0xff] }
 0x10b   : > { %vm492_vm4 = vcmp.lt.s32.totalorder %v1920_v4, 5  ;;  %v630_v16 = vmul.f32 %v967_v0, %v467_v53  ;;  %v631_v17 = vmul.f32 %v967_v0, %v466_v52  ;;  %v481_v18 = vsel %vm478_vm3, %v474_v60, %v475_v44  ;;  %v973_v52 = vld [vmem:[%s1879_s17 + $0xe] ss:$0 sm:$0xff] }
 0x10c   : > { %v606_v14 = vadd.f32 %v604_v58, %v593_v1  ;;  %v607_v15 = vadd.f32 %v605_v59, %v594_v7  ;;  %v503_v19 = vrot.slane %v1916_v2, 2  ;;  %v504_v20 = vrot.slane %v1918_v3, 2 }
 0x10d   : > { %vm506_vm5 = vcmp.lt.s32.totalorder %v1920_v4, 6  ;;  %v643_v24 = vmul.f32 %v968_v13, %v480_v61  ;;  %v644_v25 = vmul.f32 %v968_v13, %v479_v10  ;;  %v493_v26 = vsel %vm492_vm4, %v490_v11, %v491_v12 }
 0x10e   : > { %v619_v22 = vadd.f32 %v617_v8, %v606_v14  ;;  %v620_v23 = vadd.f32 %v618_v9, %v607_v15  ;;  %v494_v27 = vsel %vm492_vm4, %v489_v63, %v490_v11  ;;  %v505_v28 = vrot.slane %v1922_v5, 2 }
 0x10f   : > { %v656_v32 = vmul.f32 %v969_v21, %v481_v18  ;;  %v657_v33 = vmul.f32 %v969_v21, %v480_v61  ;;  %v495_v34 = vsel %vm492_vm4, %v488_v62, %v489_v63  ;;  %v502_v35 = vrot.slane %v1924_v6, 2 }
 0x110   : > { %v632_v30 = vadd.f32 %v630_v16, %v619_v22  ;;  %v633_v31 = vadd.f32 %v631_v17, %v620_v23  ;;  %v508_v36 = vsel %vm506_vm5, %v503_v19, %v504_v20  ;;  %v517_v37 = vrot.slane %v1916_v2, 1 }
 0x111   : > { %v669_v41 = vmul.f32 %v970_v29, %v494_v27  ;;  %v670_v42 = vmul.f32 %v970_v29, %v493_v26  ;;  %v507_v43 = vsel %vm506_vm5, %v504_v20, %v505_v28  ;;  %v518_v44 = vrot.slane %v1918_v3, 1 }
 0x112   : > { %v645_v39 = vadd.f32 %v643_v24, %v632_v30  ;;  %v646_v40 = vadd.f32 %v644_v25, %v633_v31  ;;  %v519_v45 = vrot.slane %v1922_v5, 1  ;;  %vm520_vm6 = vcmp.lt.s32.totalorder %v1920_v4, 7 }
 0x113   : > { %v682_v2 = vmul.f32 %v971_v38, %v495_v34  ;;  %v683_v49 = vmul.f32 %v971_v38, %v494_v27  ;;  %v509_v50 = vsel %vm506_vm5, %v502_v35, %v503_v19  ;;  %v516_v51 = vrot.slane %v1924_v6, 1  ;;  %v975_v6 = vld [vmem:[%s1879_s17 + $0xf] ss:$0 sm:$0xff] }
 0x114   : > { %v658_v47 = vadd.f32 %v656_v32, %v645_v39  ;;  %v659_v48 = vadd.f32 %v657_v33, %v646_v40  ;;  %v695_v3 = vmul.f32 %v972_v46, %v508_v36  ;;  %v696_v55 = vmul.f32 %v972_v46, %v507_v43 }
 0x115   : > { %v521_v5 = vsel %vm520_vm6, %v518_v44, %v519_v45  ;;  %v522_v56 = vsel %vm520_vm6, %v517_v37, %v518_v44  ;;  %v708_v60 = vmul.f32 %v973_v52, %v509_v50  ;;  %v709_v61 = vmul.f32 %v973_v52, %v508_v36 }
 0x116   : > { %v671_v53 = vadd.f32 %v669_v41, %v658_v47  ;;  %v672_v54 = vadd.f32 %v670_v42, %v659_v48  ;;  %v523_v62 = vsel %vm520_vm6, %v516_v51, %v517_v37  ;;  %v721_v1 = vmul.f32 %v974_v57, %v522_v56 }
 0x117   : > { %v722_v7 = vmul.f32 %v974_v57, %v521_v5  ;;  %v734_v10 = vmul.f32 %v975_v6, %v523_v62  ;;  %v735_v11 = vmul.f32 %v975_v6, %v522_v56 }
 0x118   : > { %v684_v58 = vadd.f32 %v682_v2, %v671_v53  ;;  %v685_v59 = vadd.f32 %v683_v49, %v672_v54 }
 0x11a   : > { %v697_v63 = vadd.f32 %v695_v3, %v684_v58  ;;  %v698_v0 = vadd.f32 %v696_v55, %v685_v59 }
 0x11c   : > { %v710_v8 = vadd.f32 %v708_v60, %v697_v63  ;;  %v711_v9 = vadd.f32 %v709_v61, %v698_v0 }
 0x11e   : > { %v723_v12 = vadd.f32 %v721_v1, %v710_v8  ;;  %v724_v13 = vadd.f32 %v722_v7, %v711_v9  ;;  %743 = sbr.rel (%p976_p10) target bundleno = 292 (0x124), region = 56 }
 0x120   : > { %v736_v14 = vadd.f32 %v734_v10, %v723_v12  ;;  %v737_v15 = vadd.f32 %v735_v11, %v724_v13 }
 0x122   : > { %738 = vst [vmem:[#allocation2] sm:$0xff] %v736_v14  ;;  %739 = vst [vmem:[#allocation2 + $0x8] sm:$0xff] %v737_v15 }
 0x123   : > { %744 = vst [vmem:[%s1912_s20] sm:$0xff] %v736_v14  ;;  %745 = vst [vmem:[%s1912_s20 + $0x8] sm:$0xff] %v737_v15 }
 0x124 PF: > { %s2213_s23 = sld [smem:[#allocation39_spill]]  ;;  %s766_s14 = sshll.u32 %s1912_s20, 4  ;;  %s2033_s14 = int_to_ptr.vmem [resolvable:$true] %s766_s14 }
 0x125   : > { %s2216_s12 = sld [smem:[#allocation44_spill]]  ;;  %s2042_s19 = scalar_lea.sflag [#allocation9], %s380_s8 }
 0x126   : > { %s1277_s5 = scalar_lea.vmem %s2033_s14, 256  ;;  %s1465_s24 = smov [#allocation13]  }
 0x127   : > { %p1278_p0 = scmp.ne.s32.totalorder %s2033_s14, %s1277_s5  ;;  %s1281_s13 = sshll.u32 %s1465_s24, 4  ;;  %s1282_s13 = int_to_ptr.vmem [resolvable:$false] %s1281_s13 }
 0x128   : > { %p1284_p9 = scmp.lt.s32.totalorder %s2033_s14, %s1282_s13 }
 0x12a   : > { %p2214_p12 = scmp.ne.s32.totalorder %s2213_s23, 0 }
 0x12b   : > { %s2217_s21 = smov %s2216_s12 }
 0x12c   : > { %s1001_s25 = scalar_select %p2214_p12, [#allocation5], [#allocation18] }
 0x12d   : > { %s2282_s11 = smov (!%p2214_p12, %s1902_s11), 0  ;;  %p1279_p1 = pnand %p1278_p0, %p2214_p12 }
 0x12e   : > { %s756_s16 = sld [smem:[%s1001_s25 + %s2282_s11]]  ;;  %s1283_s11 = scalar_lea.vmem %s1282_s13, 512 }
 0x12f   : > { %p1280_p6 = pneg %p1279_p1  ;;  %p1285_p3 = scmp.lt.s32.totalorder %s1283_s11, %s1277_s5 }
 0x131   : > { %p1286_p2 = por %p1285_p3, %p1284_p9 }
 0x133   : > { %p1287_p8 = pnand %p1286_p2, %p1280_p6 }
 0x134   : > { %s986_s3 = sshll.u32 %s756_s16, 8 }
 0x135   : > { %s2038_s1 = scalar_lea.hbm %s2216_s12, %s986_s3 }
 0x136   : > { %1290 = shalt.err (!%p1287_p8)
}
 0x137   : > { %s1291_s8 = scalar_lea.hbm %s2038_s1, 256  ;;  %s1295_s18 = scalar_lea.hbm %s2217_s21, 512 }
 0x138   : > { %p1292_p11 = scmp.ne.s32.totalorder %s2038_s1, %s1291_s8  ;;  %p1296_p13 = scmp.lt.s32.totalorder %s2038_s1, %s2217_s21 }
 0x139   : > { %p1297_p5 = scmp.lt.s32.totalorder %s1295_s18, %s1291_s8 }
 0x13a   : > { %p1293_p7 = pnand %p1292_p11, %p2214_p12 }
 0x13b   : > { %p1298_p10 = por %p1297_p5, %p1296_p13 }
 0x13c   : > { %p1294_p4 = pneg %p1293_p7 }
 0x13e   : > { %p1299_p0 = pnand %p1298_p10, %p1294_p4 }
 0x140   : > { %1302 = shalt.err (!%p1299_p0)
}
 0x141   : > { %s1466_s25 = smov 128   ;;  %s1467_s16 = smov 8  }
 0x142   : > { %1003 = dma.vmem_to_hbm [thread:$0]  (%p2214_p12), %s2033_s14, 256, %s2038_s1, %s2042_s19, %s1466_s25, %s1466_s25, %s1467_s16  }
 0x143 PF: > { %s2218_s3 = sld [smem:[#allocation28_spill]]  ;;  %p1028_p1 = scmp.ge.s32.totalorder %s1455_s15, 2 }
 0x144   : > { %s2219_s30 = sld [smem:[#allocation40_spill]] }
 0x149   : > { %s781_s0 = sand.u32 1, %s2218_s3  }
 0x14a   : > { %p2220_p6 = scmp.ne.s32.totalorder %s2219_s30, 0  ;;  %s782_s12 = scalar_lea.sflag [#allocation9], %s781_s0 }
 0x14c   : > { %p1024_p9 = pnand %p1028_p1, %p2220_p6 }
 0x14e   : > { %p1025_p3 = pneg %p1024_p9 }
 0x150   : > { %1386 = dma.done.wait (%p1025_p3), %s782_s12, 256  }
 0x151   : > { %1388 = vsyncadd (%p1025_p3), %s782_s12, 4294967040  ;;  %s32_s15 = sadd.s32 1, %s1455_s15   ;;  %s2222_s0 = sld [smem:[#allocation29_spill]] }
 0x152   : > { %p2070_p2 = scmp.ge.s32.totalorder %s32_s15, 6   ;;  %s2223_s1 = sld [smem:[#allocation30_spill]] }
 0x153   : > { %s2224_s26 = sld [smem:[#allocation41_spill]]  ;;  %s2231_s27 = smov %s1407_s28 }
 0x154   : > { %s2225_s23 = sld [smem:[#allocation31_spill]]  ;;  %s2232_s28 = smov %s1411_s29 }
 0x155   : > { %s2226_s14 = sld [smem:[#allocation42_spill]]  ;;  %s2233_s29 = smov %s1842_s7 }
 0x156   : > { %s2227_s11 = sld [smem:[#allocation34_spill]]  ;;  %s2234_s30 = smov %s1419_s6 }
 0x157   : > { %s2228_s12 = sld [smem:[#allocation35_spill]]  ;;  %s2237_s8 = smov %s1431_s9 }
 0x158   : > { %s2229_s13 = sld [smem:[#allocation36_spill]]  ;;  %s2238_s9 = smov %s1435_s10 }
 0x159   : > { %s2230_s19 = sld [smem:[#allocation37_spill]]  ;;  %s2239_s10 = smov %s1754_s22 }
 0x15a   : > { %s2235_s6 = smov %s2225_s23 }
 0x15b   : > { %s2236_s7 = smov %s2226_s14  ;;  %31 = sbr.rel (!%p2070_p2) target bundleno = 31 (0x1f), region = 136 }
 0x15f   : > { %s2240_s14 = smov %s2230_s19 }
 0x160   :  { %787 = vsyncpa [#allocation8], 1 }
 0x161   :  { %789 = vsyncpa [#allocation8 + $0x1], 1 }
 0x162   :  { %790 = vsyncpa [#allocation11], 1 }
 0x163   :  { %792 = vsyncpa [#allocation11 + $0x1], 1 }
 0x164   :  { %793 = vsyncpa [#allocation9], 1 }
 0x165   :  { %795 = vsyncpa [#allocation9 + $0x1], 1 }

</bundles_post_ra>
